<compile_context>
chip_gen: v6e
topology: v6e:2x2x1
jax: 0.10.0
libtpu: 0.0.40
codegen_flags: <defaults>
</compile_context>

<pallas_src>
import jax
import jax.numpy as jnp
from jax.experimental import pallas as pl
from jax.experimental.pallas import tpu as pltpu

EPS = 1e-5  # nn.GroupNorm default


def _round_up(x, m):
    return ((x + m - 1) // m) * m


# ----------------------------------------------------------------------------
# Kernel
# ----------------------------------------------------------------------------
def qr_kernel(pc_ref, force_ref, q_ref,
              w1q, aux1, w2q, aux2, w3q, aux3,
              w1oa, w1ob, w1oc, aux4, w2o, aux5, w3o, b3o,
              out_ref):
    """One block of TM query rows.

    aux* packs [bias; gamma; beta] of a layer as a (3, C) f32 block.
    Matmul weights (w2q, w3q, w1o*, w2o) are bf16; GN / ReLU / sigmoid are f32.
    """
    f32 = jnp.float32
    bf16 = jnp.bfloat16

    def gn_relu(h, aux):
        # GroupNorm(1, C) per row + affine + ReLU, f32 throughout.
        h = h + aux[0:1, :]                              # bias
        mu = jnp.mean(h, axis=-1, keepdims=True)
        ex2 = jnp.mean(h * h, axis=-1, keepdims=True)    # independent of mu
        var = jnp.maximum(ex2 - mu * mu, 0.0)            # guard f32 cancellation
        hn = (h - mu) * jax.lax.rsqrt(var + EPS)
        return jnp.maximum(hn * aux[1:2, :] + aux[2:3, :], 0.0)

    def lin(x, w_ref):
        # bf16 MXU matmul, f32 accumulate.
        return jnp.dot(x.astype(bf16), w_ref[...], preferred_element_type=f32)

    # ---- query branch: 3 -> 64 -> 128 -> 256 ----
    # K=3 uses <3% of the systolic array: do it as three VPU broadcast-MACs.
    q = q_ref[...]                                       # (TM, 3) f32
    w1 = w1q[...]                                        # (3, 64) f32
    h = (q[:, 0:1] * w1[0:1, :]
         + q[:, 1:2] * w1[1:2, :]
         + q[:, 2:3] * w1[2:3, :])
    h = gn_relu(h, aux1)                                 # (TM, 64)
    h = gn_relu(lin(h, w2q), aux2)                       # (TM, 128)
    h = gn_relu(lin(h, w3q), aux3)                       # (TM, 256)

    # ---- occupancy trunk ----
    # torch.cat((pc, force, x_qr), -1) @ W1_occ == three K=256 matmuls
    # accumulated in f32 (no (TM, 768) concat materialization).
    x = lin(pc_ref[...], w1oa)
    x = x + lin(force_ref[...], w1ob)
    x = x + lin(h, w1oc)
    x = gn_relu(x, aux4)                                 # (TM, 256)
    x = gn_relu(lin(x, w2o), aux5)                       # (TM, 128)

    # ---- final 128 -> 1 projection: VPU multiply + lane reduction (no N=1 MXU) ----
    r = jnp.sum(x * w3o[...], axis=-1)                   # (TM,)
    logit = r.reshape(1, 1, -1) + b3o[...]               # (1, 1, TM)
    out_ref[...] = jax.nn.sigmoid(logit)                 # lane-dense store


# ----------------------------------------------------------------------------
# Wrapper
# ----------------------------------------------------------------------------
def query_embedder_occupancy_only3(pc_embedding, force_embedding, query,
                                   kernel_params, *, tm=512):
    """pc_embedding, force_embedding: (M, 256); query: (M, 3) -> (M, 1) f32.

    Inputs may be bf16 or f32.  Keep the embedding cache in bf16 upstream
    (rather than casting here) to halve the dominant HBM read.
    """
    M = query.shape[0]
    # Row tile: big enough to amortize per-grid-step overhead, capped so the
    # grid always has >=2 blocks (both v7x TensorCores get work when M > 8).
    TM = max(8, min(tm, _round_up(pl.cdiv(M, 2), 8)))
    NB = pl.cdiv(M, TM)                  # ragged last block allowed: no jnp.pad

    def row_spec(cols):
        return pl.BlockSpec((TM, cols), lambda i: (i, 0))

    def full_spec(p):                    # constant index map -> VMEM-resident
        return pl.BlockSpec(p.shape, lambda i: (0, 0))

    in_specs = [row_spec(pc_embedding.shape[1]),
                row_spec(force_embedding.shape[1]),
                row_spec(query.shape[1])]
    in_specs += [full_spec(p) for p in kernel_params]

    # Advisory cost hint so XLA schedules neighbouring producers sensibly.
    flops = 2 * M * (3 * 64 + 64 * 128 + 128 * 256 + 3 * 256 * 256
                     + 256 * 128 + 128)
    bytes_accessed = int(
        sum(a.size * a.dtype.itemsize
            for a in (pc_embedding, force_embedding, query, *kernel_params))
        + M * 4)
    cost = pl.CostEstimate(flops=flops, transcendentals=6 * M,
                           bytes_accessed=bytes_accessed)

    out = pl.pallas_call(
        qr_kernel,
        out_shape=jax.ShapeDtypeStruct((NB, 1, TM), jnp.float32),
        grid=(NB,),
        in_specs=in_specs,
        out_specs=pl.BlockSpec((1, 1, TM), lambda i: (i, 0, 0)),
        compiler_params=pltpu.CompilerParams(
            dimension_semantics=("parallel",)),   # megacore sharding on v7x
        cost_estimate=cost,
    )(pc_embedding, force_embedding, query, *kernel_params)

    # Lane-dense (NB, 1, TM) -> (M, 1); any ragged-tail garbage rows dropped.
    return out.reshape(NB * TM)[:M].reshape(M, 1)


# ----------------------------------------------------------------------------
# Parameter construction (deterministic, synthetic)
# ----------------------------------------------------------------------------
def init_params(key):
    ks = jax.random.split(key, 22)
    it = iter(ks)

    def w(ci, co):
        return 0.1 * jax.random.normal(next(it), (ci, co), jnp.float32)

    def b(co):
        return 0.1 * jax.random.normal(next(it), (1, co), jnp.float32)

    def gn(c):
        g = 1.0 + 0.1 * jax.random.normal(next(it), (1, c), jnp.float32)
        be = 0.1 * jax.random.normal(next(it), (1, c), jnp.float32)
        return g, be

    w1q, b1q = w(3, 64), b(64);     g1q, be1q = gn(64)
    w2q, b2q = w(64, 128), b(128);  g2q, be2q = gn(128)
    w3q, b3q = w(128, 256), b(256); g3q, be3q = gn(256)
    w1o, b1o = w(768, 256), b(256); g1o, be1o = gn(256)
    w2o, b2o = w(256, 128), b(128); g2o, be2o = gn(128)
    w3o, b3o = w(128, 1), b(1)

    bf = lambda a: a.astype(jnp.bfloat16)
    f32 = lambda a: a.astype(jnp.float32)
    pack = lambda bias, g, be: jnp.concatenate([bias, g, be], axis=0)  # (3, C)

    kernel_params = (
        w1q,                          # (3, 64) f32 (VPU MAC path)
        pack(b1q, g1q, be1q),
        bf(w2q), pack(b2q, g2q, be2q),
        bf(w3q), pack(b3q, g3q, be3q),
        bf(w1o[0:256]), bf(w1o[256:512]), bf(w1o[512:768]),   # fc1_occ split
        pack(b1o, g1o, be1o),
        bf(w2o), pack(b2o, g2o, be2o),
        w3o.T,                        # (1, 128) f32 (VPU reduce path)
        b3o,                          # (1, 1) f32
    )

    # Reference uses the same (bf16-rounded where the kernel rounds) weights.
    ref_params = (w1q, b1q, g1q, be1q,
                  f32(bf(w2q)), b2q, g2q, be2q,
                  f32(bf(w3q)), b3q, g3q, be3q,
                  f32(bf(w1o)), b1o, g1o, be1o,
                  f32(bf(w2o)), b2o, g2o, be2o,
                  w3o, b3o)
    return kernel_params, ref_params


# ----------------------------------------------------------------------------
# Pure-JAX reference (mirrors PyTorch semantics, f32)
# ----------------------------------------------------------------------------
def ref_forward(pc, force, q, ref_params):
    (w1q, b1q, g1q, be1q, w2q, b2q, g2q, be2q, w3q, b3q, g3q, be3q,
     w1o, b1o, g1o, be1o, w2o, b2o, g2o, be2o, w3o, b3o) = ref_params

    def gn(h, g, be):
        mu = jnp.mean(h, axis=-1, keepdims=True)
        var = jnp.mean((h - mu) ** 2, axis=-1, keepdims=True)
        return (h - mu) / jnp.sqrt(var + EPS) * g + be

    h = jnp.maximum(gn(q @ w1q + b1q, g1q, be1q), 0.0)
    h = jnp.maximum(gn(h @ w2q + b2q, g2q, be2q), 0.0)
    h = jnp.maximum(gn(h @ w3q + b3q, g3q, be3q), 0.0)
    x = jnp.concatenate([pc, force, h], axis=-1) @ w1o + b1o
    x = jnp.maximum(gn(x, g1o, be1o), 0.0)
    x = jnp.maximum(gn(x @ w2o + b2o, g2o, be2o), 0.0)
    return jax.nn.sigmoid(x @ w3o + b3o)


# ----------------------------------------------------------------------------
if __name__ == "__main__":
    key = jax.random.PRNGKey(0)
    k_p, k_pc, k_fr, k_q = jax.random.split(key, 4)

    B, Q = 2, 8
    M = B * Q  # 16 flattened query rows (GroupNorm(1, C) acts per row)
    # Embeddings produced in bf16 (as a bf16 producer / embedding cache would);
    # query stays f32 (only 3 lanes wide).
    pc_embedding = jax.random.normal(k_pc, (M, 256), jnp.float32).astype(jnp.bfloat16)
    force_embedding = jax.random.normal(k_fr, (M, 256), jnp.float32).astype(jnp.bfloat16)
    query = jax.random.normal(k_q, (M, 3), jnp.float32)

    kernel_params, ref_params = init_params(k_p)

    out = query_embedder_occupancy_only3(pc_embedding, force_embedding, query,
                                         kernel_params)
    out = jax.block_until_ready(out)
    assert out.shape == (M, 1), out.shape

    ref = jax.block_until_ready(
        ref_forward(pc_embedding.astype(jnp.float32),
                    force_embedding.astype(jnp.float32),
                    query, ref_params))
    max_diff = jnp.max(jnp.abs(out - ref))
    assert jnp.allclose(out, ref, atol=2e-2, rtol=2e-2), (
        f"max abs diff {max_diff}")

    print("KERNEL_OK")
</pallas_src>

<mosaic_0001>
module attributes {stable_mosaic.version = 11 : i64} {
  func.func @qr_kernel(%arg0: i32, %arg1: memref<8x256xbf16, #tpu.memory_space<vmem>>, %arg2: memref<8x256xbf16, #tpu.memory_space<vmem>>, %arg3: memref<8x3xf32, #tpu.memory_space<vmem>>, %arg4: memref<3x64xf32, #tpu.memory_space<vmem>>, %arg5: memref<3x64xf32, #tpu.memory_space<vmem>>, %arg6: memref<64x128xbf16, #tpu.memory_space<vmem>>, %arg7: memref<3x128xf32, #tpu.memory_space<vmem>>, %arg8: memref<128x256xbf16, #tpu.memory_space<vmem>>, %arg9: memref<3x256xf32, #tpu.memory_space<vmem>>, %arg10: memref<256x256xbf16, #tpu.memory_space<vmem>>, %arg11: memref<256x256xbf16, #tpu.memory_space<vmem>>, %arg12: memref<256x256xbf16, #tpu.memory_space<vmem>>, %arg13: memref<3x256xf32, #tpu.memory_space<vmem>>, %arg14: memref<256x128xbf16, #tpu.memory_space<vmem>>, %arg15: memref<3x128xf32, #tpu.memory_space<vmem>>, %arg16: memref<1x128xf32, #tpu.memory_space<vmem>>, %arg17: memref<1x1xf32, #tpu.memory_space<vmem>>, %arg18: memref<1x1x8xf32, #tpu.memory_space<vmem>>) attributes {dimension_semantics = [#tpu.dimension_semantics<parallel>], iteration_bounds = array<i64: 2>, scalar_prefetch = 0 : i64, scratch_operands = 0 : i64, tpu.core_type = #tpu.core_type<tc>, window_params = [{transform_indices = @transform_0, window_bounds = array<i64: 8, 256>}, {transform_indices = @transform_1, window_bounds = array<i64: 8, 256>}, {transform_indices = @transform_2, window_bounds = array<i64: 8, 3>}, {pipeline_mode = #tpu.pipeline_mode<synchronous>, transform_indices = @transform_3, window_bounds = array<i64: 3, 64>}, {pipeline_mode = #tpu.pipeline_mode<synchronous>, transform_indices = @transform_4, window_bounds = array<i64: 3, 64>}, {pipeline_mode = #tpu.pipeline_mode<synchronous>, transform_indices = @transform_5, window_bounds = array<i64: 64, 128>}, {pipeline_mode = #tpu.pipeline_mode<synchronous>, transform_indices = @transform_6, window_bounds = array<i64: 3, 128>}, {pipeline_mode = #tpu.pipeline_mode<synchronous>, transform_indices = @transform_7, window_bounds = array<i64: 128, 256>}, {pipeline_mode = #tpu.pipeline_mode<synchronous>, transform_indices = @transform_8, window_bounds = array<i64: 3, 256>}, {pipeline_mode = #tpu.pipeline_mode<synchronous>, transform_indices = @transform_9, window_bounds = array<i64: 256, 256>}, {pipeline_mode = #tpu.pipeline_mode<synchronous>, transform_indices = @transform_10, window_bounds = array<i64: 256, 256>}, {pipeline_mode = #tpu.pipeline_mode<synchronous>, transform_indices = @transform_11, window_bounds = array<i64: 256, 256>}, {pipeline_mode = #tpu.pipeline_mode<synchronous>, transform_indices = @transform_12, window_bounds = array<i64: 3, 256>}, {pipeline_mode = #tpu.pipeline_mode<synchronous>, transform_indices = @transform_13, window_bounds = array<i64: 256, 128>}, {pipeline_mode = #tpu.pipeline_mode<synchronous>, transform_indices = @transform_14, window_bounds = array<i64: 3, 128>}, {pipeline_mode = #tpu.pipeline_mode<synchronous>, transform_indices = @transform_15, window_bounds = array<i64: 1, 128>}, {pipeline_mode = #tpu.pipeline_mode<synchronous>, transform_indices = @transform_16, window_bounds = array<i64: 1, 1>}, {transform_indices = @transform_17, window_bounds = array<i64: 1, 1, 8>}]} {
    %c0 = arith.constant 0 : index
    %c0_0 = arith.constant 0 : index
    %0 = vector.load %arg3[%c0, %c0_0] : memref<8x3xf32, #tpu.memory_space<vmem>>, vector<8x3xf32>
    %c0_1 = arith.constant 0 : index
    %c0_2 = arith.constant 0 : index
    %1 = vector.load %arg4[%c0_1, %c0_2] : memref<3x64xf32, #tpu.memory_space<vmem>>, vector<3x64xf32>
    %2 = vector.extract_strided_slice %0 {offsets = [0, 0], sizes = [8, 1], strides = [1, 1]} : vector<8x3xf32> to vector<8x1xf32>
    %3 = vector.extract_strided_slice %1 {offsets = [0, 0], sizes = [1, 64], strides = [1, 1]} : vector<3x64xf32> to vector<1x64xf32>
    %4 = vector.broadcast %2 : vector<8x1xf32> to vector<8x64xf32>
    %5 = vector.broadcast %3 : vector<1x64xf32> to vector<8x64xf32>
    %6 = arith.mulf %4, %5 : vector<8x64xf32>
    %7 = vector.extract_strided_slice %0 {offsets = [0, 1], sizes = [8, 1], strides = [1, 1]} : vector<8x3xf32> to vector<8x1xf32>
    %8 = vector.extract_strided_slice %1 {offsets = [1, 0], sizes = [1, 64], strides = [1, 1]} : vector<3x64xf32> to vector<1x64xf32>
    %9 = vector.broadcast %7 : vector<8x1xf32> to vector<8x64xf32>
    %10 = vector.broadcast %8 : vector<1x64xf32> to vector<8x64xf32>
    %11 = arith.mulf %9, %10 : vector<8x64xf32>
    %12 = arith.addf %6, %11 : vector<8x64xf32>
    %13 = vector.extract_strided_slice %0 {offsets = [0, 2], sizes = [8, 1], strides = [1, 1]} : vector<8x3xf32> to vector<8x1xf32>
    %14 = vector.extract_strided_slice %1 {offsets = [2, 0], sizes = [1, 64], strides = [1, 1]} : vector<3x64xf32> to vector<1x64xf32>
    %15 = vector.broadcast %13 : vector<8x1xf32> to vector<8x64xf32>
    %16 = vector.broadcast %14 : vector<1x64xf32> to vector<8x64xf32>
    %17 = arith.mulf %15, %16 : vector<8x64xf32>
    %18 = arith.addf %12, %17 : vector<8x64xf32>
    %c0_3 = arith.constant 0 : index
    %c0_4 = arith.constant 0 : index
    %19 = vector.load %arg5[%c0_3, %c0_4] : memref<3x64xf32, #tpu.memory_space<vmem>>, vector<1x64xf32>
    %20 = vector.broadcast %19 : vector<1x64xf32> to vector<8x64xf32>
    %21 = arith.addf %18, %20 : vector<8x64xf32>
    %cst = arith.constant dense<0.000000e+00> : vector<8xf32>
    %22 = vector.multi_reduction <add>, %21, %cst [1] : vector<8x64xf32> to vector<8xf32>
    %23 = vector.shape_cast %22 : vector<8xf32> to vector<8x1xf32>
    %cst_5 = arith.constant 6.400000e+01 : f32
    %24 = vector.broadcast %cst_5 : f32 to vector<8x1xf32>
    %25 = arith.divf %23, %24 : vector<8x1xf32>
    %26 = arith.mulf %21, %21 : vector<8x64xf32>
    %cst_6 = arith.constant dense<0.000000e+00> : vector<8xf32>
    %27 = vector.multi_reduction <add>, %26, %cst_6 [1] : vector<8x64xf32> to vector<8xf32>
    %28 = vector.shape_cast %27 : vector<8xf32> to vector<8x1xf32>
    %cst_7 = arith.constant 6.400000e+01 : f32
    %29 = vector.broadcast %cst_7 : f32 to vector<8x1xf32>
    %30 = arith.divf %28, %29 : vector<8x1xf32>
    %31 = arith.mulf %25, %25 : vector<8x1xf32>
    %32 = arith.subf %30, %31 : vector<8x1xf32>
    %cst_8 = arith.constant 0.000000e+00 : f32
    %33 = vector.broadcast %cst_8 : f32 to vector<8x1xf32>
    %34 = arith.maximumf %32, %33 : vector<8x1xf32>
    %35 = vector.broadcast %25 : vector<8x1xf32> to vector<8x64xf32>
    %36 = arith.subf %21, %35 : vector<8x64xf32>
    %cst_9 = arith.constant 9.99999974E-6 : f32
    %37 = vector.broadcast %cst_9 : f32 to vector<8x1xf32>
    %38 = arith.addf %34, %37 : vector<8x1xf32>
    %39 = math.rsqrt %38 : vector<8x1xf32>
    %40 = vector.broadcast %39 : vector<8x1xf32> to vector<8x64xf32>
    %41 = arith.mulf %36, %40 : vector<8x64xf32>
    %c1 = arith.constant 1 : index
    %c0_10 = arith.constant 0 : index
    %42 = vector.load %arg5[%c1, %c0_10] : memref<3x64xf32, #tpu.memory_space<vmem>>, vector<1x64xf32>
    %43 = vector.broadcast %42 : vector<1x64xf32> to vector<8x64xf32>
    %44 = arith.mulf %41, %43 : vector<8x64xf32>
    %c2 = arith.constant 2 : index
    %c0_11 = arith.constant 0 : index
    %45 = vector.load %arg5[%c2, %c0_11] : memref<3x64xf32, #tpu.memory_space<vmem>>, vector<1x64xf32>
    %46 = vector.broadcast %45 : vector<1x64xf32> to vector<8x64xf32>
    %47 = arith.addf %44, %46 : vector<8x64xf32>
    %cst_12 = arith.constant 0.000000e+00 : f32
    %48 = vector.broadcast %cst_12 : f32 to vector<8x64xf32>
    %49 = arith.maximumf %47, %48 : vector<8x64xf32>
    %50 = arith.truncf %49 : vector<8x64xf32> to vector<8x64xbf16>
    %c0_13 = arith.constant 0 : index
    %c0_14 = arith.constant 0 : index
    %51 = vector.load %arg6[%c0_13, %c0_14] : memref<64x128xbf16, #tpu.memory_space<vmem>>, vector<64x128xbf16>
    %cst_15 = arith.constant dense<0.000000e+00> : vector<8x128xf32>
    %52 = tpu.matmul %50, %51, %cst_15 {dimension_numbers = #tpu.dot_dimension_numbers<[1], [0], [0], [1], [0, 0, 1, 1], [], []>} : vector<8x64xbf16>, vector<64x128xbf16>, vector<8x128xf32> -> vector<8x128xf32>
    %c0_16 = arith.constant 0 : index
    %c0_17 = arith.constant 0 : index
    %53 = vector.load %arg7[%c0_16, %c0_17] : memref<3x128xf32, #tpu.memory_space<vmem>>, vector<1x128xf32>
    %54 = vector.broadcast %53 : vector<1x128xf32> to vector<8x128xf32>
    %55 = arith.addf %52, %54 : vector<8x128xf32>
    %cst_18 = arith.constant dense<0.000000e+00> : vector<8xf32>
    %56 = vector.multi_reduction <add>, %55, %cst_18 [1] : vector<8x128xf32> to vector<8xf32>
    %57 = vector.shape_cast %56 : vector<8xf32> to vector<8x1xf32>
    %cst_19 = arith.constant 1.280000e+02 : f32
    %58 = vector.broadcast %cst_19 : f32 to vector<8x1xf32>
    %59 = arith.divf %57, %58 : vector<8x1xf32>
    %60 = arith.mulf %55, %55 : vector<8x128xf32>
    %cst_20 = arith.constant dense<0.000000e+00> : vector<8xf32>
    %61 = vector.multi_reduction <add>, %60, %cst_20 [1] : vector<8x128xf32> to vector<8xf32>
    %62 = vector.shape_cast %61 : vector<8xf32> to vector<8x1xf32>
    %cst_21 = arith.constant 1.280000e+02 : f32
    %63 = vector.broadcast %cst_21 : f32 to vector<8x1xf32>
    %64 = arith.divf %62, %63 : vector<8x1xf32>
    %65 = arith.mulf %59, %59 : vector<8x1xf32>
    %66 = arith.subf %64, %65 : vector<8x1xf32>
    %cst_22 = arith.constant 0.000000e+00 : f32
    %67 = vector.broadcast %cst_22 : f32 to vector<8x1xf32>
    %68 = arith.maximumf %66, %67 : vector<8x1xf32>
    %69 = vector.broadcast %59 : vector<8x1xf32> to vector<8x128xf32>
    %70 = arith.subf %55, %69 : vector<8x128xf32>
    %cst_23 = arith.constant 9.99999974E-6 : f32
    %71 = vector.broadcast %cst_23 : f32 to vector<8x1xf32>
    %72 = arith.addf %68, %71 : vector<8x1xf32>
    %73 = math.rsqrt %72 : vector<8x1xf32>
    %74 = vector.broadcast %73 : vector<8x1xf32> to vector<8x128xf32>
    %75 = arith.mulf %70, %74 : vector<8x128xf32>
    %c1_24 = arith.constant 1 : index
    %c0_25 = arith.constant 0 : index
    %76 = vector.load %arg7[%c1_24, %c0_25] : memref<3x128xf32, #tpu.memory_space<vmem>>, vector<1x128xf32>
    %77 = vector.broadcast %76 : vector<1x128xf32> to vector<8x128xf32>
    %78 = arith.mulf %75, %77 : vector<8x128xf32>
    %c2_26 = arith.constant 2 : index
    %c0_27 = arith.constant 0 : index
    %79 = vector.load %arg7[%c2_26, %c0_27] : memref<3x128xf32, #tpu.memory_space<vmem>>, vector<1x128xf32>
    %80 = vector.broadcast %79 : vector<1x128xf32> to vector<8x128xf32>
    %81 = arith.addf %78, %80 : vector<8x128xf32>
    %cst_28 = arith.constant 0.000000e+00 : f32
    %82 = vector.broadcast %cst_28 : f32 to vector<8x128xf32>
    %83 = arith.maximumf %81, %82 : vector<8x128xf32>
    %84 = arith.truncf %83 : vector<8x128xf32> to vector<8x128xbf16>
    %c0_29 = arith.constant 0 : index
    %c0_30 = arith.constant 0 : index
    %85 = vector.load %arg8[%c0_29, %c0_30] : memref<128x256xbf16, #tpu.memory_space<vmem>>, vector<128x256xbf16>
    %cst_31 = arith.constant dense<0.000000e+00> : vector<8x256xf32>
    %86 = tpu.matmul %84, %85, %cst_31 {dimension_numbers = #tpu.dot_dimension_numbers<[1], [0], [0], [1], [0, 0, 1, 1], [], []>} : vector<8x128xbf16>, vector<128x256xbf16>, vector<8x256xf32> -> vector<8x256xf32>
    %c0_32 = arith.constant 0 : index
    %c0_33 = arith.constant 0 : index
    %87 = vector.load %arg9[%c0_32, %c0_33] : memref<3x256xf32, #tpu.memory_space<vmem>>, vector<1x256xf32>
    %88 = vector.broadcast %87 : vector<1x256xf32> to vector<8x256xf32>
    %89 = arith.addf %86, %88 : vector<8x256xf32>
    %cst_34 = arith.constant dense<0.000000e+00> : vector<8xf32>
    %90 = vector.multi_reduction <add>, %89, %cst_34 [1] : vector<8x256xf32> to vector<8xf32>
    %91 = vector.shape_cast %90 : vector<8xf32> to vector<8x1xf32>
    %cst_35 = arith.constant 2.560000e+02 : f32
    %92 = vector.broadcast %cst_35 : f32 to vector<8x1xf32>
    %93 = arith.divf %91, %92 : vector<8x1xf32>
    %94 = arith.mulf %89, %89 : vector<8x256xf32>
    %cst_36 = arith.constant dense<0.000000e+00> : vector<8xf32>
    %95 = vector.multi_reduction <add>, %94, %cst_36 [1] : vector<8x256xf32> to vector<8xf32>
    %96 = vector.shape_cast %95 : vector<8xf32> to vector<8x1xf32>
    %cst_37 = arith.constant 2.560000e+02 : f32
    %97 = vector.broadcast %cst_37 : f32 to vector<8x1xf32>
    %98 = arith.divf %96, %97 : vector<8x1xf32>
    %99 = arith.mulf %93, %93 : vector<8x1xf32>
    %100 = arith.subf %98, %99 : vector<8x1xf32>
    %cst_38 = arith.constant 0.000000e+00 : f32
    %101 = vector.broadcast %cst_38 : f32 to vector<8x1xf32>
    %102 = arith.maximumf %100, %101 : vector<8x1xf32>
    %103 = vector.broadcast %93 : vector<8x1xf32> to vector<8x256xf32>
    %104 = arith.subf %89, %103 : vector<8x256xf32>
    %cst_39 = arith.constant 9.99999974E-6 : f32
    %105 = vector.broadcast %cst_39 : f32 to vector<8x1xf32>
    %106 = arith.addf %102, %105 : vector<8x1xf32>
    %107 = math.rsqrt %106 : vector<8x1xf32>
    %108 = vector.broadcast %107 : vector<8x1xf32> to vector<8x256xf32>
    %109 = arith.mulf %104, %108 : vector<8x256xf32>
    %c1_40 = arith.constant 1 : index
    %c0_41 = arith.constant 0 : index
    %110 = vector.load %arg9[%c1_40, %c0_41] : memref<3x256xf32, #tpu.memory_space<vmem>>, vector<1x256xf32>
    %111 = vector.broadcast %110 : vector<1x256xf32> to vector<8x256xf32>
    %112 = arith.mulf %109, %111 : vector<8x256xf32>
    %c2_42 = arith.constant 2 : index
    %c0_43 = arith.constant 0 : index
    %113 = vector.load %arg9[%c2_42, %c0_43] : memref<3x256xf32, #tpu.memory_space<vmem>>, vector<1x256xf32>
    %114 = vector.broadcast %113 : vector<1x256xf32> to vector<8x256xf32>
    %115 = arith.addf %112, %114 : vector<8x256xf32>
    %cst_44 = arith.constant 0.000000e+00 : f32
    %116 = vector.broadcast %cst_44 : f32 to vector<8x256xf32>
    %117 = arith.maximumf %115, %116 : vector<8x256xf32>
    %c0_45 = arith.constant 0 : index
    %c0_46 = arith.constant 0 : index
    %118 = vector.load %arg1[%c0_45, %c0_46] : memref<8x256xbf16, #tpu.memory_space<vmem>>, vector<8x256xbf16>
    %c0_47 = arith.constant 0 : index
    %c0_48 = arith.constant 0 : index
    %119 = vector.load %arg10[%c0_47, %c0_48] : memref<256x256xbf16, #tpu.memory_space<vmem>>, vector<256x256xbf16>
    %cst_49 = arith.constant dense<0.000000e+00> : vector<8x256xf32>
    %120 = tpu.matmul %118, %119, %cst_49 {dimension_numbers = #tpu.dot_dimension_numbers<[1], [0], [0], [1], [0, 0, 1, 1], [], []>} : vector<8x256xbf16>, vector<256x256xbf16>, vector<8x256xf32> -> vector<8x256xf32>
    %c0_50 = arith.constant 0 : index
    %c0_51 = arith.constant 0 : index
    %121 = vector.load %arg2[%c0_50, %c0_51] : memref<8x256xbf16, #tpu.memory_space<vmem>>, vector<8x256xbf16>
    %c0_52 = arith.constant 0 : index
    %c0_53 = arith.constant 0 : index
    %122 = vector.load %arg11[%c0_52, %c0_53] : memref<256x256xbf16, #tpu.memory_space<vmem>>, vector<256x256xbf16>
    %cst_54 = arith.constant dense<0.000000e+00> : vector<8x256xf32>
    %123 = tpu.matmul %121, %122, %cst_54 {dimension_numbers = #tpu.dot_dimension_numbers<[1], [0], [0], [1], [0, 0, 1, 1], [], []>} : vector<8x256xbf16>, vector<256x256xbf16>, vector<8x256xf32> -> vector<8x256xf32>
    %124 = arith.addf %120, %123 : vector<8x256xf32>
    %125 = arith.truncf %117 : vector<8x256xf32> to vector<8x256xbf16>
    %c0_55 = arith.constant 0 : index
    %c0_56 = arith.constant 0 : index
    %126 = vector.load %arg12[%c0_55, %c0_56] : memref<256x256xbf16, #tpu.memory_space<vmem>>, vector<256x256xbf16>
    %cst_57 = arith.constant dense<0.000000e+00> : vector<8x256xf32>
    %127 = tpu.matmul %125, %126, %cst_57 {dimension_numbers = #tpu.dot_dimension_numbers<[1], [0], [0], [1], [0, 0, 1, 1], [], []>} : vector<8x256xbf16>, vector<256x256xbf16>, vector<8x256xf32> -> vector<8x256xf32>
    %128 = arith.addf %124, %127 : vector<8x256xf32>
    %c0_58 = arith.constant 0 : index
    %c0_59 = arith.constant 0 : index
    %129 = vector.load %arg13[%c0_58, %c0_59] : memref<3x256xf32, #tpu.memory_space<vmem>>, vector<1x256xf32>
    %130 = vector.broadcast %129 : vector<1x256xf32> to vector<8x256xf32>
    %131 = arith.addf %128, %130 : vector<8x256xf32>
    %cst_60 = arith.constant dense<0.000000e+00> : vector<8xf32>
    %132 = vector.multi_reduction <add>, %131, %cst_60 [1] : vector<8x256xf32> to vector<8xf32>
    %133 = vector.shape_cast %132 : vector<8xf32> to vector<8x1xf32>
    %cst_61 = arith.constant 2.560000e+02 : f32
    %134 = vector.broadcast %cst_61 : f32 to vector<8x1xf32>
    %135 = arith.divf %133, %134 : vector<8x1xf32>
    %136 = arith.mulf %131, %131 : vector<8x256xf32>
    %cst_62 = arith.constant dense<0.000000e+00> : vector<8xf32>
    %137 = vector.multi_reduction <add>, %136, %cst_62 [1] : vector<8x256xf32> to vector<8xf32>
    %138 = vector.shape_cast %137 : vector<8xf32> to vector<8x1xf32>
    %cst_63 = arith.constant 2.560000e+02 : f32
    %139 = vector.broadcast %cst_63 : f32 to vector<8x1xf32>
    %140 = arith.divf %138, %139 : vector<8x1xf32>
    %141 = arith.mulf %135, %135 : vector<8x1xf32>
    %142 = arith.subf %140, %141 : vector<8x1xf32>
    %cst_64 = arith.constant 0.000000e+00 : f32
    %143 = vector.broadcast %cst_64 : f32 to vector<8x1xf32>
    %144 = arith.maximumf %142, %143 : vector<8x1xf32>
    %145 = vector.broadcast %135 : vector<8x1xf32> to vector<8x256xf32>
    %146 = arith.subf %131, %145 : vector<8x256xf32>
    %cst_65 = arith.constant 9.99999974E-6 : f32
    %147 = vector.broadcast %cst_65 : f32 to vector<8x1xf32>
    %148 = arith.addf %144, %147 : vector<8x1xf32>
    %149 = math.rsqrt %148 : vector<8x1xf32>
    %150 = vector.broadcast %149 : vector<8x1xf32> to vector<8x256xf32>
    %151 = arith.mulf %146, %150 : vector<8x256xf32>
    %c1_66 = arith.constant 1 : index
    %c0_67 = arith.constant 0 : index
    %152 = vector.load %arg13[%c1_66, %c0_67] : memref<3x256xf32, #tpu.memory_space<vmem>>, vector<1x256xf32>
    %153 = vector.broadcast %152 : vector<1x256xf32> to vector<8x256xf32>
    %154 = arith.mulf %151, %153 : vector<8x256xf32>
    %c2_68 = arith.constant 2 : index
    %c0_69 = arith.constant 0 : index
    %155 = vector.load %arg13[%c2_68, %c0_69] : memref<3x256xf32, #tpu.memory_space<vmem>>, vector<1x256xf32>
    %156 = vector.broadcast %155 : vector<1x256xf32> to vector<8x256xf32>
    %157 = arith.addf %154, %156 : vector<8x256xf32>
    %cst_70 = arith.constant 0.000000e+00 : f32
    %158 = vector.broadcast %cst_70 : f32 to vector<8x256xf32>
    %159 = arith.maximumf %157, %158 : vector<8x256xf32>
    %160 = arith.truncf %159 : vector<8x256xf32> to vector<8x256xbf16>
    %c0_71 = arith.constant 0 : index
    %c0_72 = arith.constant 0 : index
    %161 = vector.load %arg14[%c0_71, %c0_72] : memref<256x128xbf16, #tpu.memory_space<vmem>>, vector<256x128xbf16>
    %cst_73 = arith.constant dense<0.000000e+00> : vector<8x128xf32>
    %162 = tpu.matmul %160, %161, %cst_73 {dimension_numbers = #tpu.dot_dimension_numbers<[1], [0], [0], [1], [0, 0, 1, 1], [], []>} : vector<8x256xbf16>, vector<256x128xbf16>, vector<8x128xf32> -> vector<8x128xf32>
    %c0_74 = arith.constant 0 : index
    %c0_75 = arith.constant 0 : index
    %163 = vector.load %arg15[%c0_74, %c0_75] : memref<3x128xf32, #tpu.memory_space<vmem>>, vector<1x128xf32>
    %164 = vector.broadcast %163 : vector<1x128xf32> to vector<8x128xf32>
    %165 = arith.addf %162, %164 : vector<8x128xf32>
    %cst_76 = arith.constant dense<0.000000e+00> : vector<8xf32>
    %166 = vector.multi_reduction <add>, %165, %cst_76 [1] : vector<8x128xf32> to vector<8xf32>
    %167 = vector.shape_cast %166 : vector<8xf32> to vector<8x1xf32>
    %cst_77 = arith.constant 1.280000e+02 : f32
    %168 = vector.broadcast %cst_77 : f32 to vector<8x1xf32>
    %169 = arith.divf %167, %168 : vector<8x1xf32>
    %170 = arith.mulf %165, %165 : vector<8x128xf32>
    %cst_78 = arith.constant dense<0.000000e+00> : vector<8xf32>
    %171 = vector.multi_reduction <add>, %170, %cst_78 [1] : vector<8x128xf32> to vector<8xf32>
    %172 = vector.shape_cast %171 : vector<8xf32> to vector<8x1xf32>
    %cst_79 = arith.constant 1.280000e+02 : f32
    %173 = vector.broadcast %cst_79 : f32 to vector<8x1xf32>
    %174 = arith.divf %172, %173 : vector<8x1xf32>
    %175 = arith.mulf %169, %169 : vector<8x1xf32>
    %176 = arith.subf %174, %175 : vector<8x1xf32>
    %cst_80 = arith.constant 0.000000e+00 : f32
    %177 = vector.broadcast %cst_80 : f32 to vector<8x1xf32>
    %178 = arith.maximumf %176, %177 : vector<8x1xf32>
    %179 = vector.broadcast %169 : vector<8x1xf32> to vector<8x128xf32>
    %180 = arith.subf %165, %179 : vector<8x128xf32>
    %cst_81 = arith.constant 9.99999974E-6 : f32
    %181 = vector.broadcast %cst_81 : f32 to vector<8x1xf32>
    %182 = arith.addf %178, %181 : vector<8x1xf32>
    %183 = math.rsqrt %182 : vector<8x1xf32>
    %184 = vector.broadcast %183 : vector<8x1xf32> to vector<8x128xf32>
    %185 = arith.mulf %180, %184 : vector<8x128xf32>
    %c1_82 = arith.constant 1 : index
    %c0_83 = arith.constant 0 : index
    %186 = vector.load %arg15[%c1_82, %c0_83] : memref<3x128xf32, #tpu.memory_space<vmem>>, vector<1x128xf32>
    %187 = vector.broadcast %186 : vector<1x128xf32> to vector<8x128xf32>
    %188 = arith.mulf %185, %187 : vector<8x128xf32>
    %c2_84 = arith.constant 2 : index
    %c0_85 = arith.constant 0 : index
    %189 = vector.load %arg15[%c2_84, %c0_85] : memref<3x128xf32, #tpu.memory_space<vmem>>, vector<1x128xf32>
    %190 = vector.broadcast %189 : vector<1x128xf32> to vector<8x128xf32>
    %191 = arith.addf %188, %190 : vector<8x128xf32>
    %cst_86 = arith.constant 0.000000e+00 : f32
    %192 = vector.broadcast %cst_86 : f32 to vector<8x128xf32>
    %193 = arith.maximumf %191, %192 : vector<8x128xf32>
    %c0_87 = arith.constant 0 : index
    %c0_88 = arith.constant 0 : index
    %194 = vector.load %arg16[%c0_87, %c0_88] : memref<1x128xf32, #tpu.memory_space<vmem>>, vector<1x128xf32>
    %195 = vector.broadcast %194 : vector<1x128xf32> to vector<8x128xf32>
    %196 = arith.mulf %193, %195 : vector<8x128xf32>
    %cst_89 = arith.constant dense<0.000000e+00> : vector<8xf32>
    %197 = vector.multi_reduction <add>, %196, %cst_89 [1] : vector<8x128xf32> to vector<8xf32>
    %198 = vector.shape_cast %197 : vector<8xf32> to vector<1x1x8xf32>
    %c0_90 = arith.constant 0 : index
    %c0_91 = arith.constant 0 : index
    %199 = vector.load %arg17[%c0_90, %c0_91] : memref<1x1xf32, #tpu.memory_space<vmem>>, vector<1x1xf32>
    %200 = vector.shape_cast %199 : vector<1x1xf32> to vector<1x1x1xf32>
    %201 = vector.broadcast %200 : vector<1x1x1xf32> to vector<1x1x8xf32>
    %202 = arith.addf %198, %201 : vector<1x1x8xf32>
    %203 = arith.negf %202 : vector<1x1x8xf32>
    %204 = math.exp %203 : vector<1x1x8xf32>
    %cst_92 = arith.constant 1.000000e+00 : f32
    %205 = vector.broadcast %cst_92 : f32 to vector<1x1x8xf32>
    %206 = arith.addf %205, %204 : vector<1x1x8xf32>
    %207 = arith.divf %205, %206 : vector<1x1x8xf32>
    %c0_93 = arith.constant 0 : index
    %c0_94 = arith.constant 0 : index
    %c0_95 = arith.constant 0 : index
    %208 = vector.load %arg18[%c0_93, %c0_94, %c0_95] : memref<1x1x8xf32, #tpu.memory_space<vmem>>, vector<1x1x8xf32>
    tpu.vector_store %arg18[%c0_93, %c0_94, %c0_95], %207 {strides = array<i32>} : memref<1x1x8xf32, #tpu.memory_space<vmem>>, vector<1x1x8xf32>,
    return
  }
  func.func @transform_0(%arg0: i32) -> (i32, i32) {
    %c0_i32 = arith.constant 0 : i32
    %c0_i32_0 = arith.constant 0 : i32
    return %arg0, %c0_i32 : i32, i32
  }
  func.func @transform_1(%arg0: i32) -> (i32, i32) {
    %c0_i32 = arith.constant 0 : i32
    %c0_i32_0 = arith.constant 0 : i32
    return %arg0, %c0_i32 : i32, i32
  }
  func.func @transform_2(%arg0: i32) -> (i32, i32) {
    %c0_i32 = arith.constant 0 : i32
    %c0_i32_0 = arith.constant 0 : i32
    return %arg0, %c0_i32 : i32, i32
  }
  func.func @transform_3(%arg0: i32) -> (i32, i32) {
    %c0_i32 = arith.constant 0 : i32
    %c0_i32_0 = arith.constant 0 : i32
    %c0_i32_1 = arith.constant 0 : i32
    return %c0_i32, %c0_i32_0 : i32, i32
  }
  func.func @transform_4(%arg0: i32) -> (i32, i32) {
    %c0_i32 = arith.constant 0 : i32
    %c0_i32_0 = arith.constant 0 : i32
    %c0_i32_1 = arith.constant 0 : i32
    return %c0_i32, %c0_i32_0 : i32, i32
  }
  func.func @transform_5(%arg0: i32) -> (i32, i32) {
    %c0_i32 = arith.constant 0 : i32
    %c0_i32_0 = arith.constant 0 : i32
    %c0_i32_1 = arith.constant 0 : i32
    return %c0_i32, %c0_i32_0 : i32, i32
  }
  func.func @transform_6(%arg0: i32) -> (i32, i32) {
    %c0_i32 = arith.constant 0 : i32
    %c0_i32_0 = arith.constant 0 : i32
    %c0_i32_1 = arith.constant 0 : i32
    return %c0_i32, %c0_i32_0 : i32, i32
  }
  func.func @transform_7(%arg0: i32) -> (i32, i32) {
    %c0_i32 = arith.constant 0 : i32
    %c0_i32_0 = arith.constant 0 : i32
    %c0_i32_1 = arith.constant 0 : i32
    return %c0_i32, %c0_i32_0 : i32, i32
  }
  func.func @transform_8(%arg0: i32) -> (i32, i32) {
    %c0_i32 = arith.constant 0 : i32
    %c0_i32_0 = arith.constant 0 : i32
    %c0_i32_1 = arith.constant 0 : i32
    return %c0_i32, %c0_i32_0 : i32, i32
  }
  func.func @transform_9(%arg0: i32) -> (i32, i32) {
    %c0_i32 = arith.constant 0 : i32
    %c0_i32_0 = arith.constant 0 : i32
    %c0_i32_1 = arith.constant 0 : i32
    return %c0_i32, %c0_i32_0 : i32, i32
  }
  func.func @transform_10(%arg0: i32) -> (i32, i32) {
    %c0_i32 = arith.constant 0 : i32
    %c0_i32_0 = arith.constant 0 : i32
    %c0_i32_1 = arith.constant 0 : i32
    return %c0_i32, %c0_i32_0 : i32, i32
  }
  func.func @transform_11(%arg0: i32) -> (i32, i32) {
    %c0_i32 = arith.constant 0 : i32
    %c0_i32_0 = arith.constant 0 : i32
    %c0_i32_1 = arith.constant 0 : i32
    return %c0_i32, %c0_i32_0 : i32, i32
  }
  func.func @transform_12(%arg0: i32) -> (i32, i32) {
    %c0_i32 = arith.constant 0 : i32
    %c0_i32_0 = arith.constant 0 : i32
    %c0_i32_1 = arith.constant 0 : i32
    return %c0_i32, %c0_i32_0 : i32, i32
  }
  func.func @transform_13(%arg0: i32) -> (i32, i32) {
    %c0_i32 = arith.constant 0 : i32
    %c0_i32_0 = arith.constant 0 : i32
    %c0_i32_1 = arith.constant 0 : i32
    return %c0_i32, %c0_i32_0 : i32, i32
  }
  func.func @transform_14(%arg0: i32) -> (i32, i32) {
    %c0_i32 = arith.constant 0 : i32
    %c0_i32_0 = arith.constant 0 : i32
    %c0_i32_1 = arith.constant 0 : i32
    return %c0_i32, %c0_i32_0 : i32, i32
  }
  func.func @transform_15(%arg0: i32) -> (i32, i32) {
    %c0_i32 = arith.constant 0 : i32
    %c0_i32_0 = arith.constant 0 : i32
    %c0_i32_1 = arith.constant 0 : i32
    return %c0_i32, %c0_i32_0 : i32, i32
  }
  func.func @transform_16(%arg0: i32) -> (i32, i32) {
    %c0_i32 = arith.constant 0 : i32
    %c0_i32_0 = arith.constant 0 : i32
    %c0_i32_1 = arith.constant 0 : i32
    return %c0_i32, %c0_i32_0 : i32, i32
  }
  func.func @transform_17(%arg0: i32) -> (i32, i32, i32) {
    %c0_i32 = arith.constant 0 : i32
    %c0_i32_0 = arith.constant 0 : i32
    %c0_i32_1 = arith.constant 0 : i32
    return %arg0, %c0_i32, %c0_i32_0 : i32, i32, i32
  }
}

</mosaic_0001>

<bundles_post_ra>
// kernel: tpu_custom_call.1
= control target key start
LH: loop header
LB: loop body
LE: loop exit
PB: predicated region body
PF: predicated region fallthrough
CT: control target
= control target key end

     0   :  { %s3734_s0 = inlined_call_operand.vmem [shape: bf16[16,256], index: 0, kind: input, shape index: {}]   ;;  %s3735_s1 = inlined_call_operand.hbm [shape: bf16[16,256], index: 1, kind: input, shape index: {}]   ;;  %s3736_s2 = inlined_call_operand.vmem [shape: f32[16,3], index: 2, kind: input, shape index: {}]   ;;  %s3737_s3 = inlined_call_operand.hbm [shape: f32[3,64], index: 3, kind: input, shape index: {}]   ;;  %s3738_s4 = inlined_call_operand.hbm [shape: f32[3,64], index: 4, kind: input, shape index: {}]   ;;  %s3739_s5 = inlined_call_operand.hbm [shape: bf16[64,128], index: 5, kind: input, shape index: {}]   ;;  %s3740_s6 = inlined_call_operand.hbm [shape: f32[3,128], index: 6, kind: input, shape index: {}]   ;;  %s3741_s7 = inlined_call_operand.hbm [shape: bf16[128,256], index: 7, kind: input, shape index: {}]   ;;  %s3742_s8 = inlined_call_operand.vmem [shape: f32[3,256], index: 8, kind: input, shape index: {}]   ;;  %s3743_s9 = inlined_call_operand.hbm [shape: bf16[256,256], index: 9, kind: input, shape index: {}]   ;;  %s3744_s10 = inlined_call_operand.hbm [shape: bf16[256,256], index: 10, kind: input, shape index: {}]   ;;  %s3745_s11 = inlined_call_operand.hbm [shape: bf16[256,256], index: 11, kind: input, shape index: {}]   ;;  %s3746_s12 = inlined_call_operand.vmem [shape: f32[3,256], index: 12, kind: input, shape index: {}]   ;;  %s3747_s13 = inlined_call_operand.hbm [shape: bf16[256,128], index: 13, kind: input, shape index: {}]   ;;  %s3748_s14 = inlined_call_operand.vmem [shape: f32[3,128], index: 14, kind: input, shape index: {}]   ;;  %s3749_s15 = inlined_call_operand.vmem [shape: f32[1,128], index: 15, kind: input, shape index: {}]   ;;  %s3750_s16 = inlined_call_operand.<no memory space> [shape: f32[1,1], index: 16, kind: input, shape index: {}]   ;;  %s3751_s17 = inlined_call_operand.hbm [shape: f32[2,1,8], index: 17, kind: output, shape index: {}]  }
   0x1   :  { %3761 = sst [smem:[#allocation29_spill]] %s3734_s0  ;;  %v22_v0 = vstv %s3750_s16 }
   0x2   :  { %3762 = sst [smem:[#allocation30_spill]] %s3735_s1  ;;  %23 = vst [vmem:[#allocation2] sm:$0x1] %v22_v0 }
   0x3   :  { %3763 = sst [smem:[#allocation31_spill]] %s3737_s3 }
   0x4   :  { %3764 = sst [smem:[#allocation32_spill]] %s3738_s4 }
   0x5   :  { %3765 = sst [smem:[#allocation33_spill]] %s3739_s5 }
   0x6   :  { %3766 = sst [smem:[#allocation34_spill]] %s3740_s6 }
   0x7   :  { %3767 = sst [smem:[#allocation35_spill]] %s3741_s7 }
   0x8   :  { %3768 = sst [smem:[#allocation36_spill]] %s3743_s9 }
   0x9   :  { %3769 = sst [smem:[#allocation37_spill]] %s3744_s10 }
   0xa   :  { %3770 = sst [smem:[#allocation38_spill]] %s3745_s11 }
   0xb   :  { %3771 = sst [smem:[#allocation39_spill]] %s3747_s13 }
   0xc   :  { %24 = vsyncpa [#allocation4], 0 }
   0xd   :  { %26 = vsyncpa [#allocation4 + $0x1], 0 }
   0xe   :  { %27 = vsyncpa [#allocation7], 0 }
   0xf   :  { %28 = vsyncpa [#allocation10], 0 }
  0x10   :  { %29 = vsyncpa [#allocation13], 0 }
  0x11   :  { %30 = vsyncpa [#allocation16], 0 }
  0x12   :  { %31 = vsyncpa [#allocation19], 0 }
  0x13   :  { %32 = vsyncpa [#allocation5], 0 }
  0x14   :  { %34 = vsyncpa [#allocation5 + $0x1], 0  ;;  %s3363_s26 = smov 0   ;;  %s3365_s27 = smov 0  }
  0x15   :  { %s3367_s28 = smov 0   ;;  %s3369_s29 = smov 0  }
  0x16 LB: > { %s3250_s16 = smov [#allocation6]   ;;  %s3384_s30 = sadd.s32 4294967295, %s3248_s29   ;;  %s3248_s29 = sphi %s3369_s29, %s3814_s29   ;;  %s3244_s28 = sphi %s3367_s28, %s3813_s28   ;;  %s3240_s27 = sphi %s3365_s27, %s3812_s27   ;;  %s3236_s26 = sphi %s3363_s26, %s3811_s26  }
  0x17   : > { %s456_s0 = sshll.u32 %s3250_s16, 4  ;;  %p2322_p0 = scmp.ge.s32.totalorder %s3248_s29, 1  ;;  %s457_s0 = int_to_ptr.vmem [resolvable:$true] %s456_s0 }
  0x18   : > { %p3757_p1 = scmp.eq.s32.totalorder %s3384_s30, 0  ;;  %p443_p2 = scmp.lt.s32.totalorder %s3248_s29, 3 }
  0x19   : > { %s3251_s19 = smov [#allocation9]   ;;  %s3252_s21 = smov [#allocation12]  }
  0x1a   : > { %p3389_p3 = pnand %p2322_p0, %p443_p2  ;;  %s477_s1 = sshll.u32 %s3251_s19, 4  ;;  %s3396_s1 = int_to_ptr.vmem [resolvable:$true] %s477_s1 }
  0x1b   : > { %s501_s22 = sshll.u32 %s3252_s21, 4  ;;  %s2913_s24 = scalar_lea.vmem %s457_s0, 64  ;;  %s3404_s22 = int_to_ptr.vmem [resolvable:$true] %s501_s22 }
  0x1c   : > { %s3772_s18 = scalar_select %p3389_p3, 1, 0 }
  0x1d   : > { %p2586_p5 = pneg %p3389_p3  ;;  %p2914_p8 = scmp.ne.s32.totalorder %s457_s0, %s2913_s24 }
  0x1e   : > { %p2921_p11 = scmp.lt.s32.totalorder %s457_s0, %s457_s0  ;;  %p2922_p12 = scmp.lt.s32.totalorder %s2913_s24, %s2913_s24 }
  0x1f   : > { %p3400_p6 = pnand %p2586_p5, %p3757_p1 }
  0x20   : > { %p2923_p13 = por %p2922_p12, %p2921_p11 }
  0x21   : > { %p3408_p7 = pneg %p3400_p6 }
  0x23   : > { %p2916_p9 = pnand %p2914_p8, %p3408_p7 }
  0x25   : > { %p2917_p10 = pneg %p2916_p9 }
  0x27   : > { %p2924_p0 = pnand %p2923_p13, %p2917_p10 }
  0x29   : > { %2927 = shalt.err (!%p2924_p0)
}
  0x2a   : > { %s3775_s3 = sld [smem:[#allocation31_spill]]  ;;  %s2939_s19 = scalar_lea.vmem %s3396_s1, 512 }
  0x2b   : > { %p2940_p2 = scmp.ne.s32.totalorder %s3396_s1, %s2939_s19  ;;  %p2947_p9 = scmp.lt.s32.totalorder %s3396_s1, %s3396_s1 }
  0x2c   : > { %p2948_p11 = scmp.lt.s32.totalorder %s2939_s19, %s2939_s19 }
  0x2d   : > { %p2942_p5 = pnand %p2940_p2, %p3408_p7 }
  0x2e   : > { %p2949_p10 = por %p2948_p11, %p2947_p9 }
  0x2f   : > { %p2943_p8 = pneg %p2942_p5 }
  0x30   : > { %2589 = dma.hbm_to_vmem [thread:$0]  (!%p3400_p6), %s3775_s3, 64, %s457_s0, [#allocation7]  }
  0x31   : > { %p2950_p12 = pnand %p2949_p10, %p2943_p8 }
  0x33   : > { %2953 = shalt.err (!%p2950_p12)
}
  0x34   : > { %s3753_s21 = smov 64   ;;  %s3754_s24 = smov 4  }
  0x35   : > { %s3776_s5 = sld [smem:[#allocation33_spill]]  ;;  %s2965_s16 = scalar_lea.vmem %s3404_s22, 2048 }
  0x36   : > { %p2966_p13 = scmp.ne.s32.totalorder %s3404_s22, %s2965_s16  ;;  %p2973_p5 = scmp.lt.s32.totalorder %s3404_s22, %s3404_s22 }
  0x37   : > { %p2974_p8 = scmp.lt.s32.totalorder %s2965_s16, %s2965_s16 }
  0x38   : > { %p2968_p0 = pnand %p2966_p13, %p3408_p7 }
  0x39   : > { %p2975_p9 = por %p2974_p8, %p2973_p5 }
  0x3a   : > { %p2969_p2 = pneg %p2968_p0 }
  0x3b   : > { %2595 = dma.hbm_to_vmem [thread:$0]  (!%p3400_p6), %s3776_s5, 512, %s3396_s1, [#allocation10], %s3753_s21, %s3753_s21, %s3754_s24  }
  0x3c   : > { %p2976_p11 = pnand %p2975_p9, %p2969_p2 }
  0x3e   : > { %2979 = shalt.err (!%p2976_p11)
}
  0x3f   : > { %s3755_s19 = smov 128   ;;  %s3256_s3 = smov 8  }
  0x40   : > { %s3777_s7 = sld [smem:[#allocation35_spill]]  ;;  %s3257_s25 = smov [#allocation15]  }
  0x41   : > { %s530_s21 = sshll.u32 %s3257_s25, 4  ;;  %s3258_s16 = smov [#allocation8]   ;;  %s531_s21 = int_to_ptr.vmem [resolvable:$true] %s530_s21 }
  0x42   : > { %s467_s24 = sshll.u32 %s3258_s16, 4  ;;  %s2991_s5 = scalar_lea.vmem %s531_s21, 4096  ;;  %s468_s24 = int_to_ptr.vmem [resolvable:$true] %s467_s24 }
  0x43   : > { %p2992_p10 = scmp.ne.s32.totalorder %s531_s21, %s2991_s5  ;;  %p2999_p0 = scmp.lt.s32.totalorder %s531_s21, %s531_s21 }
  0x44   : > { %p3000_p2 = scmp.lt.s32.totalorder %s2991_s5, %s2991_s5 }
  0x45   : > { %p2994_p12 = pnand %p2992_p10, %p3408_p7 }
  0x46   : > { %2601 = dma.hbm_to_vmem [thread:$0]  (!%p3400_p6), %s3777_s7, 2048, %s3404_s22, [#allocation13], %s3755_s19, %s3755_s19, %s3256_s3  }
  0x47   : > { %p2995_p13 = pneg %p2994_p12  ;;  %p3001_p5 = por %p3000_p2, %p2999_p0 }
  0x49   : > { %p3002_p8 = pnand %p3001_p5, %p2995_p13 }
  0x4b   : > { %3005 = shalt.err (!%p3002_p8)
}
  0x4c   : > { %s3778_s10 = sld [smem:[#allocation37_spill]]  ;;  %s3017_s0 = scalar_lea.vmem %s468_s24, 64 }
  0x4d   : > { %p3018_p9 = scmp.ne.s32.totalorder %s468_s24, %s3017_s0  ;;  %p3025_p12 = scmp.lt.s32.totalorder %s468_s24, %s468_s24 }
  0x4e   : > { %p3026_p0 = scmp.lt.s32.totalorder %s3017_s0, %s3017_s0 }
  0x4f   : > { %p3020_p11 = pnand %p3018_p9, %p3408_p7 }
  0x50   : > { %p3027_p13 = por %p3026_p0, %p3025_p12 }
  0x51   : > { %p3021_p10 = pneg %p3020_p11 }
  0x52   : > { %2607 = dma.hbm_to_vmem [thread:$0]  (!%p3400_p6), %s3778_s10, 4096, %s531_s21, [#allocation16], %s3755_s19, %s3755_s19, %s3256_s3  }
  0x53   : > { %p3028_p2 = pnand %p3027_p13, %p3021_p10 }
  0x55   : > { %3031 = shalt.err (!%p3028_p2)
}
  0x56   : > { %s3779_s4 = sld [smem:[#allocation32_spill]]  ;;  %s3259_s16 = smov [#allocation11]  }
  0x57   : > { %s491_s21 = sshll.u32 %s3259_s16, 4  ;;  %s3260_s22 = smov [#allocation14]   ;;  %s492_s21 = int_to_ptr.vmem [resolvable:$true] %s491_s21 }
  0x58   : > { %s517_s1 = sshll.u32 %s3260_s22, 4  ;;  %s3043_s19 = scalar_lea.vmem %s492_s21, 64  ;;  %s518_s1 = int_to_ptr.vmem [resolvable:$true] %s517_s1 }
  0x59   : > { %p3044_p5 = scmp.ne.s32.totalorder %s492_s21, %s3043_s19  ;;  %p3051_p11 = scmp.lt.s32.totalorder %s492_s21, %s492_s21 }
  0x5a   : > { %p3052_p10 = scmp.lt.s32.totalorder %s3043_s19, %s3043_s19 }
  0x5b   : > { %p3046_p8 = pnand %p3044_p5, %p3408_p7 }
  0x5c   : > { %2592 = dma.hbm_to_vmem [thread:$0]  (!%p3400_p6), %s3779_s4, 64, %s468_s24, [#allocation7]  }
  0x5d   : > { %p3047_p9 = pneg %p3046_p8  ;;  %p3053_p12 = por %p3052_p10, %p3051_p11 }
  0x5f   : > { %p3054_p0 = pnand %p3053_p12, %p3047_p9 }
  0x61   : > { %3057 = shalt.err (!%p3054_p0)
}
  0x62   : > { %s3780_s6 = sld [smem:[#allocation34_spill]]  ;;  %s3069_s24 = scalar_lea.vmem %s518_s1, 4096 }
  0x63   : > { %p3070_p13 = scmp.ne.s32.totalorder %s518_s1, %s3069_s24  ;;  %p3077_p5 = scmp.lt.s32.totalorder %s518_s1, %s518_s1 }
  0x64   : > { %p3078_p8 = scmp.lt.s32.totalorder %s3069_s24, %s3069_s24 }
  0x65   : > { %p3072_p2 = pnand %p3070_p13, %p3408_p7 }
  0x66   : > { %p3079_p1 = por %p3078_p8, %p3077_p5 }
  0x67   : > { %p3073_p4 = pneg %p3072_p2 }
  0x68   : > { %2598 = dma.hbm_to_vmem [thread:$0]  (!%p3400_p6), %s3780_s6, 64, %s492_s21, [#allocation10]  }
  0x69   : > { %p3080_p3 = pnand %p3079_p1, %p3073_p4 }
  0x6b   : > { %3083 = shalt.err (!%p3080_p3)
}
  0x6c   : > { %s3781_s19 = smov 128   ;;  %s3782_s9 = sld [smem:[#allocation36_spill]] }
  0x6d   : > { %s3261_s21 = smov [#allocation17]   ;;  %s3262_s0 = smov [#allocation18]  }
  0x6e   : > { %s543_s22 = sshll.u32 %s3261_s21, 4  ;;  %s559_s5 = sshll.u32 %s3262_s0, 4  ;;  %s544_s22 = int_to_ptr.vmem [resolvable:$true] %s543_s22  ;;  %s560_s5 = int_to_ptr.vmem [resolvable:$true] %s559_s5 }
  0x6f   : > { %s3095_s4 = scalar_lea.vmem %s544_s22, 4096  ;;  %p3103_p4 = scmp.lt.s32.totalorder %s544_s22, %s544_s22 }
  0x70   : > { %p3096_p9 = scmp.ne.s32.totalorder %s544_s22, %s3095_s4  ;;  %p3104_p11 = scmp.lt.s32.totalorder %s3095_s4, %s3095_s4 }
  0x72   : > { %2604 = dma.hbm_to_vmem [thread:$0]  (!%p3400_p6), %s3782_s9, 4096, %s518_s1, [#allocation13], %s3781_s19, %s3781_s19, %s3256_s3  }
  0x73   : > { %p3098_p1 = pnand %p3096_p9, %p3408_p7  ;;  %p3105_p10 = por %p3104_p11, %p3103_p4 }
  0x75   : > { %p3099_p3 = pneg %p3098_p1 }
  0x77   : > { %p3106_p12 = pnand %p3105_p10, %p3099_p3 }
  0x79   : > { %3109 = shalt.err (!%p3106_p12)
}
  0x7a   : > { %s3783_s11 = sld [smem:[#allocation38_spill]]  ;;  %s3121_s25 = scalar_lea.vmem %s560_s5, 2048 }
  0x7b   : > { %p3122_p0 = scmp.ne.s32.totalorder %s560_s5, %s3121_s25  ;;  %p3129_p5 = scmp.lt.s32.totalorder %s560_s5, %s560_s5 }
  0x7c   : > { %p3130_p8 = scmp.lt.s32.totalorder %s3121_s25, %s3121_s25 }
  0x7d   : > { %p3124_p13 = pnand %p3122_p0, %p3408_p7 }
  0x7e   : > { %p3131_p9 = por %p3130_p8, %p3129_p5 }
  0x7f   : > { %p3125_p2 = pneg %p3124_p13 }
  0x80   : > { %2610 = dma.hbm_to_vmem [thread:$0]  (!%p3400_p6), %s3783_s11, 4096, %s544_s22, [#allocation16], %s3781_s19, %s3781_s19, %s3256_s3  }
  0x81   : > { %p3132_p1 = pnand %p3131_p9, %p3125_p2 }
  0x83   : > { %3135 = shalt.err (!%p3132_p1)
}
  0x84   : > { %s3784_s4 = smov 4   ;;  %s3785_s16 = smov 64  }
  0x85   : > { %s3786_s13 = sld [smem:[#allocation39_spill]]  ;;  %s2321_s3 = sadd.s32 4294967294, %s3248_s29  }
  0x86   : > { %s3505_s20 = sadd.s32 1, %s3248_s29   ;;  %s73_s23 = sadd.s32 1, %s3244_s28 }
  0x87   : > { %s70_s19 = ssub.s32 %s3248_s29, %s3505_s20  ;;  %p80_p7 = scmp.ne.s32.totalorder %s3244_s28, %s3240_s27 }
  0x88   : > { %p71_p3 = scmp.eq.s32.totalorder %s70_s19, 0  ;;  %p81_p4 = scmp.eq.s32.totalorder %s3248_s29, 0 }
  0x89   : > { %p86_p11 = scmp.ne.s32.totalorder %s3240_s27, %s3236_s26  ;;  %p430_p10 = scmp.eq.s32.totalorder %s3384_s30, 1 }
  0x8a   : > { %s3517_s22 = scalar_select %p71_p3, %s3244_s28, %s73_s23  }
  0x8b   : > { %2613 = dma.hbm_to_vmem [thread:$0]  (!%p3400_p6), %s3786_s13, 2048, %s560_s5, [#allocation19], %s3785_s16, %s3785_s16, %s3784_s4  }
  0x8c   : > { %3787 = sst [smem:[#allocation28_spill]] %s3517_s22  ;;  %p82_p12 = por %p81_p4, %p80_p7 }
  0x8d   : > { %p3788_p0 = scmp.eq.s32.totalorder %s3384_s30, 0  ;;  %p3525_p6 = por %p430_p10, %p80_p7 }
  0x8e   : > { %p436_p2 = scmp.eq.s32.totalorder %s2321_s3, 1  ;;  %p2631_p5 = scmp.lt.s32.totalorder %s3248_s29, 2 }
  0x8f   : > { %p3521_p13 = por %p3788_p0, %p86_p11  ;;  %s590_s24 = sand.u32 1, %s3244_s28  }
  0x90   : > { %s3790_s5 = scalar_select %p3525_p6, 1, 0 }
  0x91   : > { %s3789_s1 = scalar_select %p3521_p13, 1, 0 }
  0x92   : > { %p3531_p8 = por %p436_p2, %p86_p11  ;;  %s2333_s4 = sshll.u32 %s590_s24, 3 }
  0x93   : > { %s2505_s16 = sshll.u32 %s3248_s29, 7  ;;  %s3792_s23 = sld [smem:[#allocation30_spill]] }
  0x94   : > { %s3791_s25 = scalar_select %p3531_p8, 1, 0 }
  0x95   : > { %s594_s6 = scalar_lea.vmem [#allocation3], %s2333_s4  ;;  %p3541_p9 = pnand %p2631_p5, %p82_p12 }
  0x96   : > { %s602_s7 = sshll.u32 %s594_s6, 4  ;;  %s591_s9 = scalar_lea.sflag [#allocation4], %s590_s24  ;;  %s603_s7 = int_to_ptr.vmem [resolvable:$true] %s602_s7 }
  0x97   : > { %p3138_p7 = pneg %p3541_p9 }
  0x99   : > { %s3539_s19 = scalar_lea.hbm %s3792_s23, %s2505_s16  ;;  %s3141_s0 = scalar_lea.hbm %s3792_s23, 256 }
  0x9a   : > { %s3136_s10 = scalar_lea.hbm %s3539_s19, 128  ;;  %p3142_p11 = scmp.lt.s32.totalorder %s3539_s19, %s3792_s23 }
  0x9b   : > { %p3137_p1 = scmp.ne.s32.totalorder %s3539_s19, %s3136_s10  ;;  %p3143_p10 = scmp.lt.s32.totalorder %s3141_s0, %s3136_s10 }
  0x9d   : > { %p3139_p3 = pnand %p3138_p7, %p3137_p1  ;;  %p3144_p12 = por %p3143_p10, %p3142_p11 }
  0x9f   : > { %p3140_p4 = pneg %p3139_p3 }
  0xa1   : > { %p3145_p0 = pnand %p3144_p12, %p3140_p4 }
  0xa3   : > { %3148 = shalt.err (!%p3145_p0)
}
  0xa4   : > { %s3149_s6 = scalar_lea.vmem %s603_s7, 128  ;;  %s3263_s24 = smov [#allocation3]  }
  0xa5   : > { %p3150_p2 = scmp.ne.s32.totalorder %s603_s7, %s3149_s6  ;;  %s3154_s13 = sshll.u32 %s3263_s24, 4  ;;  %s3155_s13 = int_to_ptr.vmem [resolvable:$false] %s3154_s13 }
  0xa6   : > { %s3156_s22 = scalar_lea.vmem %s3155_s13, 256  ;;  %p3157_p1 = scmp.lt.s32.totalorder %s603_s7, %s3155_s13 }
  0xa7   : > { %p3152_p5 = pnand %p3150_p2, %p3138_p7  ;;  %p3158_p3 = scmp.lt.s32.totalorder %s3156_s22, %s3149_s6 }
  0xa9   : > { %p3153_p8 = pneg %p3152_p5  ;;  %p3159_p6 = por %p3158_p3, %p3157_p1 }
  0xab   : > { %p3160_p13 = pnand %p3159_p6, %p3153_p8 }
  0xad   : > { %3163 = shalt.err (!%p3160_p13)
}
  0xae   : > { %2617 = dma.hbm_to_vmem [thread:$0]  (!%p3541_p9), %s3539_s19, 128, %s603_s7, %s591_s9  }
  0xaf   : > { %p3794_p4 = scmp.ne.s32.totalorder %s3772_s18, 0 }
  0xb0   : > { %s3562_s10 = sand.u32 (!%p3794_p4), 1, %s3240_s27   ;;  %p3795_p7 = scmp.ne.s32.totalorder (!%p3794_p4), %s3789_s1, 0 }
  0xb1   : > { %618 = sbr.rel (%p3794_p4) target bundleno = 2187 (0x88b), region = 88  ;;  %s2337_s11 = sshll.u32 (!%p3794_p4), %s3562_s10, 3 }
  0xb2   : > { %s621_s16 = scalar_lea.sflag (!%p3794_p4), [#allocation4], %s3562_s10  ;;  %s3566_s13 = scalar_lea.vmem (!%p3794_p4), [#allocation3], %s2337_s11 }
  0xb6   : > { %3207 = dma.done.wait (%p3795_p7), %s621_s16, 128  }
  0xb7   : > { %3209 = vsyncadd (%p3795_p7), %s621_s16, 4294967168  ;;  %p3796_p13 = scmp.eq.s32.totalorder %s3384_s30, 0 }
  0xb9   : > { %3211 = dma.done.wait (%p3796_p13), [#allocation7], 128   ;;  %p3797_p6 = pmov %p3796_p13 }
  0xbb   : > { %3213 = vsyncadd (%p3797_p6), [#allocation7], 4294967168  ;;  %p3798_p8 = pmov %p3797_p6 }
  0xbc   : > { %p3799_p9 = pmov %p3797_p6 }
  0xbd   : > { %3215 = dma.done.wait (%p3798_p8), [#allocation10], 576  }
  0xbe   : > { %3217 = vsyncadd (%p3799_p9), [#allocation10], 4294966720  ;;  %p3800_p11 = pmov %p3797_p6 }
  0xbf   : > { %p3801_p10 = pmov %p3797_p6 }
  0xc0   : > { %3219 = dma.done.wait (%p3800_p11), [#allocation13], 6144  }
  0xc1   : > { %3221 = vsyncadd (%p3801_p10), [#allocation13], 4294961152  ;;  %p3802_p12 = pmov %p3797_p6 }
  0xc2   : > { %p3803_p0 = pmov %p3797_p6 }
  0xc3   : > { %3223 = dma.done.wait (%p3802_p12), [#allocation16], 8192  }
  0xc4   : > { %3225 = vsyncadd (%p3803_p0), [#allocation16], 4294959104  ;;  %p3804_p2 = pmov %p3803_p0 }
  0xc5   : > { %p3805_p5 = pmov %p3803_p0 }
  0xc6   : > { %3227 = dma.done.wait (%p3804_p2), [#allocation19], 2048  }
  0xc7   : > { %3229 = vsyncadd (%p3805_p5), [#allocation19], 4294965248  ;;  %p719_p1 = scmp.lt.s32.totalorder %s3384_s30, 1  ;;  %v3264_v1 = vmov 0   ;;  %v3265_v2 = vmov 2   ;;  %v3266_v4 = vmov 1   ;;  %v736_v5 = vlaneseq }
  0xc8   : > { %2692 = vset.pattern.permute.xlu0 %v3264_v1  ;;  %2694 = vset.pattern.permute.xlu1 %v3265_v2  ;;  %v730_v10 = vld [vmem:[#allocation6] sm:$0x7]  ;;  %v2350_v21 = vld [vmem:[#allocation8] ss:$0 sm:$0xff]  ;;  %vm767_vm0 = vcmask 523264   ;;  %v3267_v28 = vmov 0.0  }
  0xc9   : > { %s3594_s7 = scalar_select %p719_p1, %s3384_s30, 1  ;;  %1048 = vmatprep.mubr.bf16.mxu1 %v3264_v1  ;;  %v3603_v6 = vshrl.u32 %v736_v5, 7  ;;  %v2696_v27 = vld [vmem:[#allocation9 + $0x18] sm:$0xff]   ;;  %2534 = vmatprep.subr.bf16.mxu0 %v3267_v28  ;;  %vm3268_vm1 = vmmov 0   ;;  %v2697_v29 = vld [vmem:[#allocation9 + $0x10] sm:$0xff]   ;;  %v2698_v30 = vld [vmem:[#allocation9 + $0x8] sm:$0xff]  }
  0xca   : > { %2542 = vmatprep.mubr.msk.bf16.mxu0 %vm3268_vm1, %v3267_v28  ;;  %2535 = vmatpush3.bf16.msra.mxu0 %v2696_v27  ;;  %v2699_v31 = vld [vmem:[#allocation9] sm:$0xff]   ;;  %v2351_v42 = vld [vmem:[#allocation8 + $0x1] ss:$0 sm:$0xff]  ;;  %v2352_v44 = vld [vmem:[#allocation8 + $0x2] ss:$0 sm:$0xff]  ;;  %s3806_s21 = sld [smem:[#allocation29_spill]] }
  0xcb   : > { %s2506_s9 = sshll.u32 %s3594_s7, 3  ;;  %v3606_v7 = vsub.s32 0, %v3603_v6  ;;  %v3609_v8 = vsub.s32 1, %v3603_v6  ;;  %v757_v9 = vsub.s32 2, %v3603_v6  ;;  %2536 = vmatprep.subr.bf16.mxu0 %v3267_v28  ;;  %v2353_v49 = vld [vmem:[#allocation11] ss:$0 sm:$0xff] }
  0xcc   : > { %s727_s1 = scalar_lea.vmem %s3736_s2, %s2506_s9  ;;  %v2700_v56 = vld [vmem:[#allocation12 + $0x74] ss:$8 sps:$4 sm:$0xff]   ;;  %v2702_v57 = vld [vmem:[#allocation12 + $0x70] ss:$8 sps:$4 sm:$0xff]   ;;  %v2703_v58 = vld [vmem:[#allocation12 + $0x64] ss:$8 sps:$4 sm:$0xff]  }
  0xcd   : > { %v729_v3 = vld [vmem:[%s727_s1] sm:$0xff]  ;;  %v739_v12 = vrot.slane %v730_v10, %v3606_v7  ;;  %v748_v13 = vrot.slane %v730_v10, %v3609_v8  ;;  %v758_v14 = vrot.slane %v730_v10, %v757_v9  ;;  %1016 = vmatprep.subr.bf16.mxu1 %v2700_v56  ;;  %v2706_v60 = vld [vmem:[#allocation12 + $0x54] ss:$8 sps:$4 sm:$0xff]   ;;  %v2708_v61 = vld [vmem:[#allocation12 + $0x50] ss:$8 sps:$4 sm:$0xff]   ;;  %s718_s7 = scalar_lea.vmem [#allocation20], %s3562_s10 }
  0xce   : > { %733 = vperm.xlu0 %2692, %v729_v3   ;;  %752 = vperm.xlu1 %2694, %v729_v3   ;;  %v2705_v59 = vld [vmem:[#allocation12 + $0x60] ss:$8 sps:$4 sm:$0xff]   ;;  %v2709_v62 = vld [vmem:[#allocation12 + $0x44] ss:$8 sps:$4 sm:$0xff]   ;;  %v2712_v0 = vld [vmem:[#allocation12 + $0x34] ss:$8 sps:$4 sm:$0xff]  }
  0xcf   : > { %2537 = vmatpush3.bf16.msra.mxu0 %v2697_v29  ;;  %1017 = vmatpush1.bf16.msra.mxu1 %v2702_v57  ;;  %v2711_v63 = vld [vmem:[#allocation12 + $0x40] ss:$8 sps:$4 sm:$0xff]   ;;  %v2715_v2 = vld [vmem:[#allocation12 + $0x24] ss:$8 sps:$4 sm:$0xff]   ;;  %v2720_v9 = vld [vmem:[#allocation12 + $0x10] ss:$8 sps:$4 sm:$0xff]  }
  0xd0   : > { %2538 = vmatprep.subr.bf16.mxu0 %v3267_v28  ;;  %1018 = vmatprep.subr.bf16.mxu1 %v2703_v58  ;;  %v2721_v10 = vld [vmem:[#allocation12 + $0x4] ss:$8 sps:$4 sm:$0xff]   ;;  %v2724_v29 = vld [vmem:[#allocation15 + $0x70] ss:$8 sps:$4 sm:$0xff]   ;;  %s723_s0 = scalar_lea.vmem %s3806_s21, %s2506_s9  ;;  %s2145_s9 = sshll.u32 %s718_s7, 4  ;;  %vm2130_vm2 = vcmask 57344   ;;  %s2146_s9 = int_to_ptr.vmem [resolvable:$true] %s2145_s9 }
  0xd1   : > { %v3627_v57 = vld [vmem:[%s723_s0] sm:$0xff]  ;;  %s2133_s19 = scalar_lea.sflag [#allocation5], %s3562_s10  ;;  %s3164_s3 = scalar_lea.vmem %s2146_s9, 16 }
  0xd2   : > { %2693 = vset.pattern.permute.xlu0 %v3266_v4  ;;  %v2718_v4 = vld [vmem:[#allocation12 + $0x14] ss:$8 sps:$4 sm:$0xff]   ;;  %v2414_v58 = vcombine.high %v3627_v57, %v3627_v57  ;;  %p3165_p3 = scmp.ne.s32.totalorder %s2146_s9, %s3164_s3  ;;  %p3807_p4 = scmp.ne.s32.totalorder %s3790_s5, 0 }
  0xd3   : > { %742 = vperm.xlu0 %2693, %v729_v3   ;;  %2539 = vmatpush3.bf16.msra.mxu0 %v2698_v30  ;;  %v2717_v3 = vld [vmem:[#allocation12 + $0x20] ss:$8 sps:$4 sm:$0xff]   ;;  %v2726_v30 = vld [vmem:[#allocation15 + $0x74] ss:$8 sps:$4 sm:$0xff]   ;;  %s3269_s21 = smov [#allocation20]  }
  0xd4   : > { %2540 = vmatprep.subr.bf16.mxu0 %v3267_v28  ;;  %1019 = vmatpush1.bf16.msra.mxu1 %v2705_v59  ;;  %v2757_v59 = vld [vmem:[#allocation15 + $0x10] ss:$8 sps:$4 sm:$0xff]   ;;  %p3166_p7 = pnand %p3165_p3, %p3807_p4  ;;  %s3168_s0 = sshll.u32 %s3269_s21, 4  ;;  %s3169_s0 = int_to_ptr.vmem [resolvable:$false] %s3168_s0 }
  0xd5   : > { %1020 = vmatprep.subr.bf16.mxu1 %v2706_v60  ;;  %v2765_v60 = vld [vmem:[#allocation15 + $0x4] ss:$8 sps:$4 sm:$0xff]   ;;  %p3171_p6 = scmp.lt.s32.totalorder %s2146_s9, %s3169_s0 }
  0xd6   : > { %p3167_p13 = pneg %p3166_p7 }
  0xd7   : > { %2695 = vset.pattern.permute.xlu0 %v3264_v1  ;;  %2541 = vmatpush3.bf16.msra.mxu0 %v2699_v31  ;;  %v2714_v1 = vld [vmem:[#allocation12 + $0x30] ss:$8 sps:$4 sm:$0xff]   ;;  %v2729_v31 = vld [vmem:[#allocation15 + $0x64] ss:$8 sps:$4 sm:$0xff]  }
  0xd8   : > { %1021 = vmatpush1.bf16.msra.mxu1 %v2708_v61  ;;  %1342 = vmatprep.subr.bf16.mxu0 %v2726_v30  ;;  %v2766_v61 = vld [vmem:[#allocation14 + $0x10] ss:$8 sps:$4 sm:$0xff]   ;;  %v2816_v30 = vld [vmem:[#allocation14 + $0x94] ss:$8 sps:$4 sm:$0xff]  }
  0xd9   : > { %1022 = vmatprep.subr.bf16.mxu1 %v2709_v62  ;;  %v2774_v62 = vld [vmem:[#allocation14 + $0x4] ss:$8 sps:$4 sm:$0xff]  }
  0xdc   : > { %1023 = vmatpush1.bf16.msra.mxu1 %v2711_v63  ;;  %v2763_v63 = vld [vmem:[#allocation15] ss:$8 sps:$4 sm:$0xff]  }
  0xdd   : > { %1024 = vmatprep.subr.bf16.mxu1 %v2712_v0  ;;  %v2771_v0 = vld [vmem:[#allocation15 + $0xf4] ss:$8 sps:$4 sm:$0xff]  }
  0xe0   : > { %1025 = vmatpush1.bf16.msra.mxu1 %v2714_v1  ;;  %v2772_v1 = vld [vmem:[#allocation14] ss:$8 sps:$4 sm:$0xff]  }
  0xe1   : > { %1026 = vmatprep.subr.bf16.mxu1 %v2715_v2  ;;  %v2780_v2 = vld [vmem:[#allocation14 + $0xf4] ss:$8 sps:$4 sm:$0xff]  }
  0xe4   : > { %1027 = vmatpush1.bf16.msra.mxu1 %v2717_v3  ;;  %v2769_v3 = vld [vmem:[#allocation15 + $0xf0] ss:$8 sps:$4 sm:$0xff]  }
  0xe5   : > { %1028 = vmatprep.subr.bf16.mxu1 %v2718_v4  ;;  %v2777_v4 = vld [vmem:[#allocation15 + $0xe4] ss:$8 sps:$4 sm:$0xff]  }
  0xe8   : > { %1029 = vmatpush1.bf16.msra.mxu1 %v2720_v9  ;;  %v2778_v9 = vld [vmem:[#allocation14 + $0xf0] ss:$8 sps:$4 sm:$0xff]  }
  0xe9   : > { %1030 = vmatprep.subr.bf16.mxu1 %v2721_v10  ;;  %v2786_v10 = vld [vmem:[#allocation14 + $0xe4] ss:$8 sps:$4 sm:$0xff]  }
 0x149   : > { %v734_v11 = vpop.permute.xlu0 %733  ;;  %v753_v15 = vpop.permute.xlu1 %752 }
 0x14a   : > { %v740_v17 = vmul.f32 %v739_v12, %v734_v11  ;;  %v759_v19 = vmul.f32 %v758_v14, %v753_v15  ;;  %v2723_v11 = vld [vmem:[#allocation12] ss:$8 sps:$4 sm:$0xff]  }
 0x14b   : > { %1031 = vmatpush1.bf16.msra.mxu1 %v2723_v11  ;;  %v2775_v11 = vld [vmem:[#allocation15 + $0xe0] ss:$8 sps:$4 sm:$0xff]  }
 0x14e   : > { %v743_v16 = vpop.permute.xlu0 %742 }
 0x14f   : > { %v749_v18 = vmul.f32 %v748_v13, %v743_v16 }
 0x151   : > { %v750_v20 = vadd.f32 %v749_v18, %v740_v17 }
 0x153   : > { %v760_v22 = vadd.f32 %v759_v19, %v750_v20 }
 0x155   : > { %v766_v23 = vadd.f32 %v2350_v21, %v760_v22  ;;  %v2359_v22 = vld [vmem:[#allocation11 + $0x1] ss:$0 sm:$0xff] }
 0x157   : > { %v768_v24 = vsel %vm767_vm0, %v766_v23, 0.0  ;;  %v773_v25 = vmul.f32 %v766_v23, %v766_v23 }
 0x158   : > { %769 = vadd.xlane.f32.xlu1 %v768_v24  ;;  %v2360_v24 = vld [vmem:[#allocation11 + $0x2] ss:$0 sm:$0xff] }
 0x159   : > { %v774_v26 = vsel %vm767_vm0, %v773_v25, 0.0 }
 0x15a   : > { %775 = vadd.xlane.f32.xlu0 %v774_v26 }
 0x1e1   : > { %v770_v32 = vpop.xlane.xlu1 %769 }
 0x1e2   : > { %v772_v33 = vmul.f32 0.015625, %v770_v32  ;;  %v2730_v32 = vld [vmem:[#allocation14 + $0x70] ss:$8 sps:$4 sm:$0xff]  }
 0x1e3   : > { %v776_v34 = vpop.xlane.xlu0 %775 }
 0x1e4   : > { %v778_v35 = vmul.f32 %v772_v33, %v772_v33  ;;  %v777_v36 = vmul.f32 0.015625, %v776_v34  ;;  %v781_v40 = vsub.f32 %v766_v23, %v772_v33  ;;  %v2732_v33 = vld [vmem:[#allocation14 + $0x74] ss:$8 sps:$4 sm:$0xff]   ;;  %v2727_v34 = vld [vmem:[#allocation15 + $0x60] ss:$8 sps:$4 sm:$0xff]  }
 0x1e5   : > { %1550 = vmatprep.subr.bf16.mxu1 %v2732_v33  ;;  %v2814_v33 = vld [vmem:[#allocation14 + $0x90] ss:$8 sps:$4 sm:$0xff]  }
 0x1e6   : > { %v779_v37 = vsub.f32 %v777_v36, %v778_v35  ;;  %v2738_v35 = vld [vmem:[#allocation14 + $0x64] ss:$8 sps:$4 sm:$0xff]   ;;  %v2735_v36 = vld [vmem:[#allocation15 + $0x54] ss:$8 sps:$4 sm:$0xff]  }
 0x1e8   : > { %v780_v38 = vmax.f32 %v779_v37, 0.0  ;;  %v2736_v37 = vld [vmem:[#allocation14 + $0x60] ss:$8 sps:$4 sm:$0xff]  }
 0x1ea   : > { %v782_v39 = vadd.f32 1e-05, %v780_v38  ;;  %v2744_v38 = vld [vmem:[#allocation14 + $0x54] ss:$8 sps:$4 sm:$0xff]  }
 0x1ec   : > { %2888 = vrsqrt.f32 %v782_v39  ;;  %v2733_v39 = vld [vmem:[#allocation15 + $0x50] ss:$8 sps:$4 sm:$0xff]  }
 0x1f9   : > { %v2889_v41 = vpop.eup %2888 }
 0x1fa   : > { %v784_v43 = vmul.f32 %v2889_v41, %v781_v40  ;;  %v2741_v40 = vld [vmem:[#allocation15 + $0x44] ss:$8 sps:$4 sm:$0xff]   ;;  %v2742_v41 = vld [vmem:[#allocation14 + $0x50] ss:$8 sps:$4 sm:$0xff]  }
 0x1fc   : > { %v790_v45 = vmul.f32 %v2351_v42, %v784_v43  ;;  %v2750_v42 = vld [vmem:[#allocation14 + $0x44] ss:$8 sps:$4 sm:$0xff]   ;;  %v2739_v43 = vld [vmem:[#allocation15 + $0x40] ss:$8 sps:$4 sm:$0xff]  }
 0x1fe   : > { %v796_v46 = vadd.f32 %v2352_v44, %v790_v45  ;;  %v2747_v44 = vld [vmem:[#allocation15 + $0x34] ss:$8 sps:$4 sm:$0xff]   ;;  %v2748_v45 = vld [vmem:[#allocation14 + $0x40] ss:$8 sps:$4 sm:$0xff]  }
 0x200   : > { %v797_v47 = vmax.f32 %v796_v46, 0.0  ;;  %v2756_v46 = vld [vmem:[#allocation14 + $0x34] ss:$8 sps:$4 sm:$0xff]  }
 0x202   : > { %v798_v48 = vpack.c.bf16 %v797_v47, %v797_v47  ;;  %v2745_v47 = vld [vmem:[#allocation15 + $0x30] ss:$8 sps:$4 sm:$0xff]  }
 0x204   : > { %2543 = vmatmul.mubr.msk.bf16.vlgmr.msra.gmra.mxu0 %vm767_vm0, %v798_v48  ;;  %v2753_v48 = vld [vmem:[#allocation15 + $0x24] ss:$8 sps:$4 sm:$0xff]  }
 0x205   : > { %1343 = vmatpush1.bf16.msra.mxu0 %v2724_v29  ;;  %v2808_v29 = vld [vmem:[#allocation14 + $0xa0] ss:$8 sps:$4 sm:$0xff]  }
 0x206   : > { %1344 = vmatprep.subr.bf16.mxu0 %v2729_v31  ;;  %v2805_v31 = vld [vmem:[#allocation15 + $0x90] ss:$8 sps:$4 sm:$0xff]  }
 0x209   : > { %1345 = vmatpush1.bf16.msra.mxu0 %v2727_v34  ;;  %v2821_v34 = vld [vmem:[#allocation14 + $0x84] ss:$8 sps:$4 sm:$0xff]  }
 0x20a   : > { %1346 = vmatprep.subr.bf16.mxu0 %v2735_v36  ;;  %v2819_v36 = vld [vmem:[#allocation14 + $0x80] ss:$8 sps:$4 sm:$0xff]  }
 0x20d   : > { %1347 = vmatpush1.bf16.msra.mxu0 %v2733_v39  ;;  %v2413_v39 = vcombine.low %v3627_v57, %v3627_v57 }
 0x20e   : > { %1348 = vmatprep.subr.bf16.mxu0 %v2741_v40  ;;  %v2824_v40 = vld [vmem:[#allocation17 + $0x70] ss:$8 sps:$4 sm:$0xff]  }
 0x211   : > { %1349 = vmatpush1.bf16.msra.mxu0 %v2739_v43  ;;  %v2832_v43 = vld [vmem:[#allocation17 + $0x54] ss:$8 sps:$4 sm:$0xff]  }
 0x212   : > { %1350 = vmatprep.subr.bf16.mxu0 %v2747_v44  ;;  %v2830_v44 = vld [vmem:[#allocation17 + $0x50] ss:$8 sps:$4 sm:$0xff]  }
 0x215   : > { %1351 = vmatpush1.bf16.msra.mxu0 %v2745_v47  ;;  %v2838_v47 = vld [vmem:[#allocation17 + $0x34] ss:$8 sps:$4 sm:$0xff]  }
 0x216   : > { %1352 = vmatprep.subr.bf16.mxu0 %v2753_v48  ;;  %v2836_v48 = vld [vmem:[#allocation17 + $0x30] ss:$8 sps:$4 sm:$0xff]  }
 0x2c4   : > { %v873_v50 = vpop.f32.mrf.mxu0 }
 0x2c5   : > { %v874_v51 = vadd.f32 %v2353_v49, %v873_v50  ;;  %v2754_v49 = vld [vmem:[#allocation14 + $0x30] ss:$8 sps:$4 sm:$0xff]   ;;  %v2762_v50 = vld [vmem:[#allocation14 + $0x24] ss:$8 sps:$4 sm:$0xff]  }
 0x2c6   : > { %v2544_v52 = vpop.f32.mrf.mxu0 }
 0x2c7   : > { %879 = vadd.xlane.f32.xlu1 %v874_v51  ;;  %v883_v53 = vmul.f32 %v874_v51, %v874_v51  ;;  %v2759_v52 = vld [vmem:[#allocation15 + $0x14] ss:$8 sps:$4 sm:$0xff]  }
 0x2c8   : > { %v876_v54 = vpop.f32.mrf.mxu0 }
 0x2c9   : > { %884 = vadd.xlane.f32.xlu0 %v883_v53  ;;  %v2760_v53 = vld [vmem:[#allocation14 + $0x20] ss:$8 sps:$4 sm:$0xff]  }
 0x2ca   : > { %v2545_v55 = vpop.f32.mrf.mxu0  ;;  %v3623_v54 = vld [vmem:[%s3566_s13] sm:$0xff]  ;;  %s2502_s13 = sshll.u32 %s3384_s30, 4  ;;  %s3170_s30 = scalar_lea.vmem %s3169_s0, 32 }
 0x2cb   : > { %v2768_v55 = vld [vmem:[#allocation14 + $0x14] ss:$8 sps:$4 sm:$0xff]   ;;  %v2380_v56 = vcombine.high %v3623_v54, %v3623_v54  ;;  %s2143_s1 = scalar_lea.hbm %s3751_s17, %s2502_s13  ;;  %p3172_p8 = scmp.lt.s32.totalorder %s3170_s30, %s3164_s3 }
 0x2cd   : > { %1374 = vmatprep.mubr.bf16.mxu0 %v2380_v56  ;;  %p3173_p9 = por %p3172_p8, %p3171_p6 }
 0x2cf   : > { %p3174_p11 = pnand %p3173_p9, %p3167_p13 }
 0x350   : > { %v880_v12 = vpop.xlane.xlu1 %879 }
 0x351   : > { %v882_v13 = vmul.f32 0.0078125, %v880_v12  ;;  %v2783_v12 = vld [vmem:[#allocation15 + $0xd4] ss:$8 sps:$4 sm:$0xff]  }
 0x352   : > { %v885_v14 = vpop.xlane.xlu0 %884 }
 0x353   : > { %v887_v15 = vmul.f32 %v882_v13, %v882_v13  ;;  %v886_v16 = vmul.f32 0.0078125, %v885_v14  ;;  %v890_v20 = vsub.f32 %v874_v51, %v882_v13  ;;  %v2751_v51 = vld [vmem:[#allocation15 + $0x20] ss:$8 sps:$4 sm:$0xff]   ;;  %v2792_v14 = vld [vmem:[#allocation14 + $0xd4] ss:$8 sps:$4 sm:$0xff]  }
 0x354   : > { %1353 = vmatpush1.bf16.msra.mxu0 %v2751_v51  ;;  %v2784_v13 = vld [vmem:[#allocation14 + $0xe0] ss:$8 sps:$4 sm:$0xff]   ;;  %v2844_v51 = vld [vmem:[#allocation17 + $0x14] ss:$8 sps:$4 sm:$0xff]  }
 0x355   : > { %v888_v17 = vsub.f32 %v886_v16, %v887_v15  ;;  %1354 = vmatprep.subr.bf16.mxu0 %v2759_v52  ;;  %v2781_v15 = vld [vmem:[#allocation15 + $0xd0] ss:$8 sps:$4 sm:$0xff]   ;;  %v2789_v16 = vld [vmem:[#allocation15 + $0xc4] ss:$8 sps:$4 sm:$0xff]  }
 0x356   : > { %v2842_v52 = vld [vmem:[#allocation17 + $0x10] ss:$8 sps:$4 sm:$0xff]  }
 0x357   : > { %v889_v18 = vmax.f32 %v888_v17, 0.0  ;;  %v2790_v17 = vld [vmem:[#allocation14 + $0xd0] ss:$8 sps:$4 sm:$0xff]  }
 0x358   : > { %1355 = vmatpush1.bf16.msra.mxu0 %v2757_v59 }
 0x359   : > { %v891_v19 = vadd.f32 1e-05, %v889_v18  ;;  %1356 = vmatprep.subr.bf16.mxu0 %v2765_v60  ;;  %v2798_v18 = vld [vmem:[#allocation14 + $0xc4] ss:$8 sps:$4 sm:$0xff]  }
 0x35b   : > { %2890 = vrsqrt.f32 %v891_v19  ;;  %v2787_v19 = vld [vmem:[#allocation15 + $0xc0] ss:$8 sps:$4 sm:$0xff]  }
 0x35c   : > { %1357 = vmatpush1.bf16.msra.mxu0 %v2763_v63 }
 0x35d   : > { %1358 = vmatprep.subr.bf16.mxu0 %v2771_v0 }
 0x360   : > { %1359 = vmatpush2.bf16.msra.mxu0 %v2769_v3 }
 0x361   : > { %1360 = vmatprep.subr.bf16.mxu0 %v2777_v4  ;;  %v2850_v4 = vld [vmem:[#allocation17 + $0xf4] ss:$8 sps:$4 sm:$0xff]  }
 0x364   : > { %1361 = vmatpush2.bf16.msra.mxu0 %v2775_v11  ;;  %v2851_v11 = vld [vmem:[#allocation17 + $0xe0] ss:$8 sps:$4 sm:$0xff]  }
 0x365   : > { %1362 = vmatprep.subr.bf16.mxu0 %v2783_v12  ;;  %v2856_v12 = vld [vmem:[#allocation17 + $0xd4] ss:$8 sps:$4 sm:$0xff]  }
 0x368   : > { %v2891_v21 = vpop.eup %2890  ;;  %1363 = vmatpush2.bf16.msra.mxu0 %v2781_v15  ;;  %v2857_v15 = vld [vmem:[#allocation17 + $0xc0] ss:$8 sps:$4 sm:$0xff]  }
 0x369   : > { %v893_v23 = vmul.f32 %v2891_v21, %v890_v20  ;;  %1364 = vmatprep.subr.bf16.mxu0 %v2789_v16  ;;  %v2795_v20 = vld [vmem:[#allocation15 + $0xb4] ss:$8 sps:$4 sm:$0xff]   ;;  %v2796_v21 = vld [vmem:[#allocation14 + $0xc0] ss:$8 sps:$4 sm:$0xff]  }
 0x36a   : > { %v2862_v16 = vld [vmem:[#allocation17 + $0xb4] ss:$8 sps:$4 sm:$0xff]  }
 0x36b   : > { %v899_v25 = vmul.f32 %v2359_v22, %v893_v23  ;;  %v2804_v22 = vld [vmem:[#allocation14 + $0xb4] ss:$8 sps:$4 sm:$0xff]   ;;  %v2793_v23 = vld [vmem:[#allocation15 + $0xb0] ss:$8 sps:$4 sm:$0xff]  }
 0x36c   : > { %1365 = vmatpush2.bf16.msra.mxu0 %v2787_v19  ;;  %v2863_v19 = vld [vmem:[#allocation17 + $0xa0] ss:$8 sps:$4 sm:$0xff]  }
 0x36d   : > { %v905_v26 = vadd.f32 %v2360_v24, %v899_v25  ;;  %1366 = vmatprep.subr.bf16.mxu0 %v2795_v20  ;;  %v2801_v24 = vld [vmem:[#allocation15 + $0xa4] ss:$8 sps:$4 sm:$0xff]   ;;  %v2802_v25 = vld [vmem:[#allocation14 + $0xb0] ss:$8 sps:$4 sm:$0xff]   ;;  %v2868_v20 = vld [vmem:[#allocation17 + $0x94] ss:$8 sps:$4 sm:$0xff]  }
 0x36f   : > { %v906_v27 = vmax.f32 %v905_v26, 0.0  ;;  %v2810_v26 = vld [vmem:[#allocation14 + $0xa4] ss:$8 sps:$4 sm:$0xff]  }
 0x370   : > { %1367 = vmatpush2.bf16.msra.mxu0 %v2793_v23  ;;  %v2869_v23 = vld [vmem:[#allocation17 + $0x80] ss:$8 sps:$4 sm:$0xff]  }
 0x371   : > { %v907_v28 = vpack.c.bf16 %v906_v27, %v906_v27  ;;  %v2799_v27 = vld [vmem:[#allocation15 + $0xa0] ss:$8 sps:$4 sm:$0xff]   ;;  %1368 = vmatprep.subr.bf16.mxu0 %v2801_v24 }
 0x373   : > { %1049 = vmatmul.mubr.bf16.vlgmr.msra.gmra.mxu1 %v907_v28  ;;  %v2807_v28 = vld [vmem:[#allocation15 + $0x94] ss:$8 sps:$4 sm:$0xff]  }
 0x374   : > { %1551 = vmatpush1.bf16.msra.mxu1 %v2730_v32  ;;  %1582 = vmatprep.mubr.bf16.mxu1 %v2414_v58  ;;  %v2813_v32 = vld [vmem:[#allocation15 + $0x84] ss:$8 sps:$4 sm:$0xff]  }
 0x375   : > { %1552 = vmatprep.subr.bf16.mxu1 %v2738_v35  ;;  %1369 = vmatpush2.bf16.msra.mxu0 %v2799_v27  ;;  %v2811_v35 = vld [vmem:[#allocation15 + $0x80] ss:$8 sps:$4 sm:$0xff]  }
 0x376   : > { %1370 = vmatprep.subr.bf16.mxu0 %v2807_v28 }
 0x378   : > { %1553 = vmatpush1.bf16.msra.mxu1 %v2736_v37  ;;  %v2826_v37 = vld [vmem:[#allocation17 + $0x74] ss:$8 sps:$4 sm:$0xff]  }
 0x379   : > { %1554 = vmatprep.subr.bf16.mxu1 %v2744_v38  ;;  %1371 = vmatpush2.bf16.msra.mxu0 %v2805_v31  ;;  %v2379_v38 = vcombine.low %v3623_v54, %v3623_v54  ;;  %v2845_v54 = vld [vmem:[#allocation17] ss:$8 sps:$4 sm:$0xff]  }
 0x37a   : > { %1372 = vmatprep.subr.bf16.mxu0 %v2813_v32 }
 0x37c   : > { %1555 = vmatpush1.bf16.msra.mxu1 %v2742_v41  ;;  %v2829_v41 = vld [vmem:[#allocation17 + $0x64] ss:$8 sps:$4 sm:$0xff]  }
 0x37d   : > { %1556 = vmatprep.subr.bf16.mxu1 %v2750_v42  ;;  %1373 = vmatpush2.bf16.msra.mxu0 %v2811_v35  ;;  %v2827_v42 = vld [vmem:[#allocation17 + $0x60] ss:$8 sps:$4 sm:$0xff]  }
 0x37e   : > { %1785 = vmatprep.subr.bf16.mxu0 %v2826_v37 }
 0x380   : > { %1557 = vmatpush1.bf16.msra.mxu1 %v2748_v45  ;;  %1375 = vmatmul.mubr.bf16.vlgmr.msra.gmra.mxu0 %v2379_v38  ;;  %v2835_v45 = vld [vmem:[#allocation17 + $0x44] ss:$8 sps:$4 sm:$0xff]  }
 0x381   : > { %1558 = vmatprep.subr.bf16.mxu1 %v2756_v46  ;;  %1786 = vmatpush1.bf16.msra.mxu0 %v2824_v40  ;;  %v2833_v46 = vld [vmem:[#allocation17 + $0x40] ss:$8 sps:$4 sm:$0xff]  }
 0x382   : > { %1787 = vmatprep.subr.bf16.mxu0 %v2829_v41 }
 0x384   : > { %1559 = vmatpush1.bf16.msra.mxu1 %v2754_v49  ;;  %v2841_v49 = vld [vmem:[#allocation17 + $0x24] ss:$8 sps:$4 sm:$0xff]  }
 0x385   : > { %1560 = vmatprep.subr.bf16.mxu1 %v2762_v50  ;;  %1788 = vmatpush1.bf16.msra.mxu0 %v2827_v42  ;;  %v2839_v50 = vld [vmem:[#allocation17 + $0x20] ss:$8 sps:$4 sm:$0xff]  }
 0x386   : > { %1789 = vmatprep.subr.bf16.mxu0 %v2832_v43  ;;  %v2377_v42 = vld [vmem:[%s3742_s8 + $0x1] ss:$4 sm:$0x3]  ;;  %v2378_v43 = vld [vmem:[%s3742_s8 + $0x2] ss:$4 sm:$0x3] }
 0x388   : > { %1561 = vmatpush1.bf16.msra.mxu1 %v2760_v53  ;;  %v2847_v53 = vld [vmem:[#allocation17 + $0x4] ss:$8 sps:$4 sm:$0xff]  }
 0x389   : > { %1562 = vmatprep.subr.bf16.mxu1 %v2768_v55  ;;  %1790 = vmatpush1.bf16.msra.mxu0 %v2830_v44  ;;  %v924_v55 = vld [vmem:[%s3742_s8] ss:$4 sm:$0x3] }
 0x38a   : > { %1791 = vmatprep.subr.bf16.mxu0 %v2835_v45  ;;  %v929_v56 = vrot.slane %v924_v55, %v3606_v7  ;;  %v933_v57 = vrot.slane %v924_v55, %v3609_v8 }
 0x38c   : > { %1563 = vmatpush1.bf16.msra.mxu1 %v2766_v61 }
 0x38d   : > { %1564 = vmatprep.subr.bf16.mxu1 %v2774_v62  ;;  %1792 = vmatpush1.bf16.msra.mxu0 %v2833_v46  ;;  %v1083_v46 = vrot.slane %v2377_v42, %v3606_v7 }
 0x38e   : > { %1793 = vmatprep.subr.bf16.mxu0 %v2838_v47  ;;  %v1087_v47 = vrot.slane %v2377_v42, %v3609_v8 }
 0x390   : > { %1565 = vmatpush1.bf16.msra.mxu1 %v2772_v1 }
 0x391   : > { %1566 = vmatprep.subr.bf16.mxu1 %v2780_v2  ;;  %1794 = vmatpush1.bf16.msra.mxu0 %v2836_v48 }
 0x392   : > { %1795 = vmatprep.subr.bf16.mxu0 %v2841_v49 }
 0x394   : > { %1567 = vmatpush2.bf16.msra.mxu1 %v2778_v9  ;;  %v2848_v9 = vld [vmem:[#allocation17 + $0xf0] ss:$8 sps:$4 sm:$0xff]  }
 0x395   : > { %1568 = vmatprep.subr.bf16.mxu1 %v2786_v10  ;;  %1796 = vmatpush1.bf16.msra.mxu0 %v2839_v50  ;;  %v2853_v10 = vld [vmem:[#allocation17 + $0xe4] ss:$8 sps:$4 sm:$0xff]   ;;  %v1098_v50 = vrot.slane %v2378_v43, %v3606_v7 }
 0x396   : > { %1797 = vmatprep.subr.bf16.mxu0 %v2844_v51  ;;  %v1102_v51 = vrot.slane %v2378_v43, %v3609_v8 }
 0x398   : > { %1569 = vmatpush2.bf16.msra.mxu1 %v2784_v13  ;;  %v2854_v13 = vld [vmem:[#allocation17 + $0xd0] ss:$8 sps:$4 sm:$0xff]  }
 0x399   : > { %1570 = vmatprep.subr.bf16.mxu1 %v2792_v14  ;;  %1798 = vmatpush1.bf16.msra.mxu0 %v2842_v52  ;;  %v2859_v14 = vld [vmem:[#allocation17 + $0xc4] ss:$8 sps:$4 sm:$0xff]  }
 0x39a   : > { %1799 = vmatprep.subr.bf16.mxu0 %v2847_v53 }
 0x39c   : > { %1571 = vmatpush2.bf16.msra.mxu1 %v2790_v17  ;;  %v2860_v17 = vld [vmem:[#allocation17 + $0xb0] ss:$8 sps:$4 sm:$0xff]  }
 0x39d   : > { %1572 = vmatprep.subr.bf16.mxu1 %v2798_v18  ;;  %1800 = vmatpush1.bf16.msra.mxu0 %v2845_v54  ;;  %v2865_v18 = vld [vmem:[#allocation17 + $0xa4] ss:$8 sps:$4 sm:$0xff]  }
 0x39e   : > { %1801 = vmatprep.subr.bf16.mxu0 %v2850_v4 }
 0x3a0   : > { %1573 = vmatpush2.bf16.msra.mxu1 %v2796_v21  ;;  %v2866_v21 = vld [vmem:[#allocation17 + $0x90] ss:$8 sps:$4 sm:$0xff]  }
 0x3a1   : > { %1574 = vmatprep.subr.bf16.mxu1 %v2804_v22  ;;  %1802 = vmatpush2.bf16.msra.mxu0 %v2848_v9  ;;  %v2871_v22 = vld [vmem:[#allocation17 + $0x84] ss:$8 sps:$4 sm:$0xff]  }
 0x3a2   : > { %1803 = vmatprep.subr.bf16.mxu0 %v2853_v10 }
 0x3a4   : > { %1575 = vmatpush2.bf16.msra.mxu1 %v2802_v25 }
 0x3a5   : > { %1576 = vmatprep.subr.bf16.mxu1 %v2810_v26  ;;  %1804 = vmatpush2.bf16.msra.mxu0 %v2851_v11 }
 0x3a6   : > { %1805 = vmatprep.subr.bf16.mxu0 %v2856_v12 }
 0x3a8   : > { %1577 = vmatpush2.bf16.msra.mxu1 %v2808_v29 }
 0x3a9   : > { %1578 = vmatprep.subr.bf16.mxu1 %v2816_v30  ;;  %1806 = vmatpush2.bf16.msra.mxu0 %v2854_v13 }
 0x3aa   : > { %1807 = vmatprep.subr.bf16.mxu0 %v2859_v14 }
 0x3ac   : > { %1579 = vmatpush2.bf16.msra.mxu1 %v2814_v33 }
 0x3ad   : > { %1580 = vmatprep.subr.bf16.mxu1 %v2821_v34  ;;  %1808 = vmatpush2.bf16.msra.mxu0 %v2857_v15 }
 0x3ae   : > { %1809 = vmatprep.subr.bf16.mxu0 %v2862_v16  ;;  %v2872_v16 = vld [vmem:[#allocation18 + $0x78] sm:$0xff]  }
 0x3b0   : > { %1581 = vmatpush2.bf16.msra.mxu1 %v2819_v36 }
 0x3b1   : > { %1810 = vmatpush2.bf16.msra.mxu0 %v2860_v17  ;;  %v2873_v17 = vld [vmem:[#allocation18 + $0x38] sm:$0xff]   ;;  %2512 = vmatprep.subr.bf16.mxu1 %v2872_v16 }
 0x3b2   : > { %1811 = vmatprep.subr.bf16.mxu0 %v2865_v18  ;;  %v2874_v18 = vld [vmem:[#allocation18 + $0x70] sm:$0xff]  }
 0x3b3   : > { %1583 = vmatmul.mubr.bf16.vlgmr.msra.gmra.mxu1 %v2413_v39 }
 0x3b4   : > { %2513 = vmatpush3.bf16.msra.mxu1 %v2873_v17  ;;  %v2498_v17 = vld [vmem:[%s3748_s14 + $0x1] ss:$0 sm:$0xff] }
 0x3b5   : > { %1812 = vmatpush2.bf16.msra.mxu0 %v2863_v19  ;;  %v2875_v19 = vld [vmem:[#allocation18 + $0x30] sm:$0xff]   ;;  %2514 = vmatprep.subr.bf16.mxu1 %v2874_v18 }
 0x3b6   : > { %1813 = vmatprep.subr.bf16.mxu0 %v2868_v20  ;;  %v2876_v20 = vld [vmem:[#allocation18 + $0x68] sm:$0xff]  }
 0x3b8   : > { %2515 = vmatpush3.bf16.msra.mxu1 %v2875_v19  ;;  %v2499_v19 = vld [vmem:[%s3748_s14 + $0x2] ss:$0 sm:$0xff] }
 0x3b9   : > { %1814 = vmatpush2.bf16.msra.mxu0 %v2866_v21  ;;  %v2877_v21 = vld [vmem:[#allocation18 + $0x28] sm:$0xff]   ;;  %2516 = vmatprep.subr.bf16.mxu1 %v2876_v20 }
 0x3ba   : > { %1815 = vmatprep.subr.bf16.mxu0 %v2871_v22  ;;  %v2878_v22 = vld [vmem:[#allocation18 + $0x60] sm:$0xff]  }
 0x3bc   : > { %2517 = vmatpush3.bf16.msra.mxu1 %v2877_v21 }
 0x3bd   : > { %1816 = vmatpush2.bf16.msra.mxu0 %v2869_v23  ;;  %v2879_v23 = vld [vmem:[#allocation18 + $0x20] sm:$0xff]   ;;  %2518 = vmatprep.subr.bf16.mxu1 %v2878_v22 }
 0x3be   : > { %v2500_v22 = vld [vmem:[%s3749_s15] ss:$0 sm:$0xff] }
 0x3c0   : > { %2519 = vmatpush3.bf16.msra.mxu1 %v2879_v23 }
 0x433   : > { %v1050_v58 = vpop.f32.mrf.mxu1 }
 0x434   : > { %v3640_v59 = vadd.f32 %v1050_v58, %v929_v56 }
 0x435   : > { %v1052_v60 = vpop.f32.mrf.mxu1 }
 0x436   : > { %v3642_v61 = vadd.f32 %v1052_v60, %v933_v57  ;;  %v1062_v0 = vmul.f32 %v3640_v59, %v3640_v59 }
 0x437   : > { %v1054_v62 = vpop.f32.mrf.mxu1 }
 0x438   : > { %v1057_v63 = vadd.f32 %v3642_v61, %v3640_v59  ;;  %v1063_v1 = vmul.f32 %v3642_v61, %v3642_v61 }
 0x439   : > { %v1055_v2 = vpop.f32.mrf.mxu1 }
 0x43a   : > { %1058 = vadd.xlane.f32.xlu1 %v1057_v63  ;;  %v1064_v3 = vadd.f32 %v1063_v1, %v1062_v0 }
 0x43c   : > { %1065 = vadd.xlane.f32.xlu0 %v1064_v3 }
 0x440   : > { %v1376_v24 = vpop.f32.mrf.mxu0 }
 0x442   : > { %v1378_v26 = vpop.f32.mrf.mxu0 }
 0x444   : > { %v1380_v29 = vpop.f32.mrf.mxu0 }
 0x445   : > { %v2885_v29 = vld [vmem:[#allocation18 + $0x8] sm:$0xff]  }
 0x446   : > { %v1381_v34 = vpop.f32.mrf.mxu0 }
 0x473   : > { %v1584_v25 = vpop.f32.mrf.mxu1 }
 0x474   : > { %v1585_v27 = vadd.f32 %v1584_v25, %v1376_v24  ;;  %v2880_v24 = vld [vmem:[#allocation18 + $0x58] sm:$0xff]  }
 0x475   : > { %v1586_v28 = vpop.f32.mrf.mxu1  ;;  %v2881_v25 = vld [vmem:[#allocation18 + $0x18] sm:$0xff]   ;;  %2520 = vmatprep.subr.bf16.mxu1 %v2880_v24 }
 0x476   : > { %v1587_v30 = vadd.f32 %v1586_v28, %v1378_v26  ;;  %v2882_v26 = vld [vmem:[#allocation18 + $0x50] sm:$0xff]   ;;  %2521 = vmatpush3.bf16.msra.mxu1 %v2881_v25  ;;  %v2884_v28 = vld [vmem:[#allocation18 + $0x48] sm:$0xff]  }
 0x477   : > { %v1588_v32 = vpop.f32.mrf.mxu1  ;;  %2522 = vmatprep.subr.bf16.mxu1 %v2882_v26 }
 0x479   : > { %v1589_v36 = vpop.f32.mrf.mxu1 }
 0x4c3   : > { %v1059_v31 = vpop.xlane.xlu1 %1058 }
 0x4c4   : > { %v1061_v33 = vmul.f32 0.00390625, %v1059_v31  ;;  %v2887_v31 = vld [vmem:[#allocation18] sm:$0xff]  }
 0x4c5   : > { %v1066_v35 = vpop.xlane.xlu0 %1065 }
 0x4c6   : > { %v1067_v37 = vmul.f32 0.00390625, %v1066_v35  ;;  %v1068_v38 = vmul.f32 %v1061_v33, %v1061_v33  ;;  %v1071_v44 = vsub.f32 %v3640_v59, %v1061_v33  ;;  %v1072_v45 = vsub.f32 %v3642_v61, %v1061_v33  ;;  %v1828_v61 = vld [vmem:[%s3746_s12] ss:$4 sm:$0x3] }
 0x4c7   : > { %v1833_v62 = vrot.slane %v1828_v61, %v3606_v7  ;;  %v1837_v1 = vrot.slane %v1828_v61, %v3609_v8 }
 0x4c8   : > { %v1069_v39 = vsub.f32 %v1067_v37, %v1068_v38 }
 0x4ca   : > { %v1070_v40 = vmax.f32 %v1069_v39, 0.0 }
 0x4cc   : > { %v1073_v41 = vadd.f32 1e-05, %v1070_v40  ;;  %v2479_v40 = vld [vmem:[%s3746_s12 + $0x1] ss:$4 sm:$0x3] }
 0x4ce   : > { %2892 = vrsqrt.f32 %v1073_v41  ;;  %v2480_v41 = vld [vmem:[%s3746_s12 + $0x2] ss:$4 sm:$0x3] }
 0x4db   : > { %v2893_v48 = vpop.eup %2892 }
 0x4dc   : > { %v1076_v49 = vmul.f32 %v2893_v48, %v1072_v45  ;;  %v1075_v52 = vmul.f32 %v2893_v48, %v1071_v44  ;;  %v1867_v44 = vrot.slane %v2479_v40, %v3606_v7  ;;  %v1871_v45 = vrot.slane %v2479_v40, %v3609_v8 }
 0x4dd   : > { %v1882_v48 = vrot.slane %v2480_v41, %v3606_v7 }
 0x4de   : > { %v1091_v53 = vmul.f32 %v1087_v47, %v1076_v49  ;;  %v1090_v54 = vmul.f32 %v1083_v46, %v1075_v52  ;;  %v1886_v49 = vrot.slane %v2480_v41, %v3609_v8 }
 0x4e0   : > { %v1106_v55 = vadd.f32 %v1102_v51, %v1091_v53  ;;  %v1105_v56 = vadd.f32 %v1098_v50, %v1090_v54 }
 0x4e2   : > { %v1108_v57 = vmax.f32 %v1106_v55, 0.0  ;;  %v1107_v58 = vmax.f32 %v1105_v56, 0.0 }
 0x4e4   : > { %v1592_v59 = vpack.c.bf16 %v1108_v57, %v1108_v57  ;;  %v1591_v60 = vpack.c.bf16 %v1107_v58, %v1107_v58 }
 0x4e6   : > { %1817 = vmatprep.mubr.bf16.mxu0 %v1592_v59 }
 0x4e7   : > { %1818 = vmatmul.mubr.bf16.vlgmr.msra.gmra.mxu0 %v1591_v60  ;;  %v2481_v60 = vld [vmem:[%s3748_s14] ss:$0 sm:$0xff] }
 0x5a7   : > { %v1819_v63 = vpop.f32.mrf.mxu0 }
 0x5a8   : > { %v1826_v0 = vadd.f32 %v1819_v63, %v1585_v27  ;;  %v2883_v27 = vld [vmem:[#allocation18 + $0x10] sm:$0xff]  }
 0x5a9   : > { %v1821_v2 = vpop.f32.mrf.mxu0  ;;  %2523 = vmatpush3.bf16.msra.mxu1 %v2883_v27 }
 0x5aa   : > { %v3667_v3 = vadd.f32 %v1833_v62, %v1826_v0  ;;  %v1827_v4 = vadd.f32 %v1821_v2, %v1587_v30  ;;  %2524 = vmatprep.subr.bf16.mxu1 %v2884_v28  ;;  %v2886_v30 = vld [vmem:[#allocation18 + $0x40] sm:$0xff]  }
 0x5ab   : > { %v1823_v9 = vpop.f32.mrf.mxu0  ;;  %v2105_v2 = vld [vmem:[#allocation2] sm:$0x1] }
 0x5ac   : > { %v1841_v10 = vadd.f32 %v1837_v1, %v1827_v4  ;;  %v1846_v13 = vmul.f32 %v3667_v3, %v3667_v3 }
 0x5ad   : > { %v1824_v11 = vpop.f32.mrf.mxu0  ;;  %2525 = vmatpush3.bf16.msra.mxu1 %v2885_v29 }
 0x5ae   : > { %v1842_v12 = vadd.f32 %v1841_v10, %v3667_v3  ;;  %v1847_v14 = vmul.f32 %v1841_v10, %v1841_v10  ;;  %2526 = vmatprep.subr.bf16.mxu1 %v2886_v30 }
 0x5b0   : > { %1843 = vadd.xlane.f32.xlu1 %v1842_v12  ;;  %v1848_v15 = vadd.f32 %v1847_v14, %v1846_v13 }
 0x5b1   : > { %2527 = vmatpush3.bf16.msra.mxu1 %v2887_v31 }
 0x5b2   : > { %1849 = vadd.xlane.f32.xlu0 %v1848_v15 }
 0x639   : > { %v1844_v32 = vpop.xlane.xlu1 %1843 }
 0x63a   : > { %v1845_v33 = vmul.f32 0.00390625, %v1844_v32  ;;  %v2124_v32 = vand.u32 127, %v736_v5 }
 0x63b   : > { %v1850_v34 = vpop.xlane.xlu0 %1849 }
 0x63c   : > { %v1851_v35 = vmul.f32 0.00390625, %v1850_v34  ;;  %v1852_v36 = vmul.f32 %v1845_v33, %v1845_v33  ;;  %v1855_v42 = vsub.f32 %v3667_v3, %v1845_v33  ;;  %v1856_v43 = vsub.f32 %v1841_v10, %v1845_v33 }
 0x63d   : > { %v2127_v33 = vsub.s32 %v2124_v32, %v3603_v6 }
 0x63e   : > { %v1853_v37 = vsub.f32 %v1851_v35, %v1852_v36 }
 0x640   : > { %v1854_v38 = vmax.f32 %v1853_v37, 0.0 }
 0x642   : > { %v1857_v39 = vadd.f32 1e-05, %v1854_v38 }
 0x644   : > { %2894 = vrsqrt.f32 %v1857_v39 }
 0x651   : > { %v2895_v46 = vpop.eup %2894 }
 0x652   : > { %v1860_v47 = vmul.f32 %v2895_v46, %v1856_v43  ;;  %v1859_v50 = vmul.f32 %v2895_v46, %v1855_v42 }
 0x654   : > { %v1875_v51 = vmul.f32 %v1871_v45, %v1860_v47  ;;  %v1874_v52 = vmul.f32 %v1867_v44, %v1859_v50 }
 0x656   : > { %v1890_v53 = vadd.f32 %v1886_v49, %v1875_v51  ;;  %v1889_v54 = vadd.f32 %v1882_v48, %v1874_v52 }
 0x658   : > { %v1892_v55 = vmax.f32 %v1890_v53, 0.0  ;;  %v1891_v56 = vmax.f32 %v1889_v54, 0.0 }
 0x65a   : > { %v1894_v57 = vpack.c.bf16 %v1892_v55, %v1892_v55  ;;  %v1893_v58 = vpack.c.bf16 %v1891_v56, %v1891_v56 }
 0x65c   : > { %2060 = vmatprep.mubr.bf16.mxu1 %v1894_v57 }
 0x65d   : > { %2061 = vmatmul.mubr.bf16.vlgmr.msra.gmra.mxu1 %v1893_v58 }
 0x71d   : > { %v2528_v59 = vpop.f32.mrf.mxu1 }
 0x71f   : > { %v2529_v61 = vpop.f32.mrf.mxu1 }
 0x720   : > { %v2530_v62 = vadd.f32 %v2529_v61, %v2528_v59 }
 0x721   : > { %v2531_v63 = vpop.f32.mrf.mxu1 }
 0x722   : > { %v2063_v8 = vadd.f32 %v2530_v62, %v2481_v60 }
 0x723   : > { %v2532_v0 = vpop.f32.mrf.mxu1 }
 0x724   : > { %2068 = vadd.xlane.f32.xlu1 %v2063_v8  ;;  %v2071_v1 = vmul.f32 %v2063_v8, %v2063_v8 }
 0x726   : > { %2072 = vadd.xlane.f32.xlu0 %v2071_v1 }
 0x73c   : > { %2108 = vperm.xlu0 %2695, %v2105_v2  }
 0x7ad   : > { %v2069_v3 = vpop.xlane.xlu1 %2068 }
 0x7ae   : > { %v2070_v4 = vmul.f32 0.0078125, %v2069_v3 }
 0x7af   : > { %v2073_v9 = vpop.xlane.xlu0 %2072 }
 0x7b0   : > { %v2075_v10 = vmul.f32 %v2070_v4, %v2070_v4  ;;  %v2074_v11 = vmul.f32 0.0078125, %v2073_v9  ;;  %v2078_v15 = vsub.f32 %v2063_v8, %v2070_v4 }
 0x7b2   : > { %v2076_v12 = vsub.f32 %v2074_v11, %v2075_v10 }
 0x7b4   : > { %v2077_v13 = vmax.f32 %v2076_v12, 0.0 }
 0x7b6   : > { %v2079_v14 = vadd.f32 1e-05, %v2077_v13 }
 0x7b7   : > { %v2109_v25 = vpop.permute.xlu0 %2108 }
 0x7b8   : > { %2896 = vrsqrt.f32 %v2079_v14  ;;  %v2114_v26 = vrot.slane %v2109_v25, %v3606_v7 }
 0x7c5   : > { %v2897_v16 = vpop.eup %2896 }
 0x7c6   : > { %v2081_v18 = vmul.f32 %v2897_v16, %v2078_v15 }
 0x7c8   : > { %v2087_v20 = vmul.f32 %v2498_v17, %v2081_v18 }
 0x7ca   : > { %v2093_v21 = vadd.f32 %v2499_v19, %v2087_v20 }
 0x7cc   : > { %v2094_v23 = vmax.f32 %v2093_v21, 0.0 }
 0x7ce   : > { %v2102_v24 = vmul.f32 %v2500_v22, %v2094_v23 }
 0x7d0   : > { %2103 = vadd.xlane.f32.xlu1 %v2102_v24 }
 0x859   : > { %v2104_v27 = vpop.xlane.xlu1 %2103 }
 0x85a   : > { %v2115_v28 = vadd.f32 %v2114_v26, %v2104_v27 }
 0x85c   : > { %v2501_v29 = vmul.f32 -1.442695, %v2115_v28 }
 0x85e   : > { %2898 = vpow2.f32 %v2501_v29 }
 0x86b   : > { %v2899_v30 = vpop.eup %2898 }
 0x86c   : > { %v2119_v31 = vadd.f32 1.0, %v2899_v30 }
 0x86e   : > { %2900 = vrcp.f32 %v2119_v31 }
 0x87b   : > { %v2901_v34 = vpop.eup %2900 }
 0x87c   : > { %v2128_v35 = vrot.slane %v2901_v34, %v2127_v33 }
 0x87e   : > { %2131 = vst.msk [vmem:[%s718_s7] sm:$0x1] %vm2130_vm2, %v2128_v35 }
 0x87f   : > { %3177 = shalt.err (!%p3174_p11)
}
 0x880   : > { %s3178_s4 = scalar_lea.hbm %s2143_s1, 16  ;;  %s3182_s24 = scalar_lea.hbm %s3751_s17, 32 }
 0x881   : > { %p3179_p10 = scmp.ne.s32.totalorder %s2143_s1, %s3178_s4  ;;  %p3183_p2 = scmp.lt.s32.totalorder %s2143_s1, %s3751_s17 }
 0x882   : > { %p3184_p5 = scmp.lt.s32.totalorder %s3182_s24, %s3178_s4 }
 0x883   : > { %p3180_p12 = pnand %p3179_p10, %p3807_p4 }
 0x884   : > { %p3185_p1 = por %p3184_p5, %p3183_p2 }
 0x885   : > { %p3181_p0 = pneg %p3180_p12 }
 0x887   : > { %p3186_p3 = pnand %p3185_p1, %p3181_p0 }
 0x889   : > { %3189 = shalt.err (!%p3186_p3)
}
 0x88a   : > { %2584 = dma.vmem_to_hbm [thread:$0]  (%p3807_p4), %s2146_s9, 16, %s2143_s1, %s2133_s19  }
 0x88b PF: > { %s2157_s13 = sand.u32 1, %s3236_s26   ;;  %p3808_p7 = scmp.ne.s32.totalorder %s3791_s25, 0 }
 0x88c   : > { %p3809_p13 = scmp.ge.s32.totalorder %s3248_s29, 2  ;;  %s2158_s7 = scalar_lea.sflag [#allocation5], %s2157_s13 }
 0x88e   : > { %p2619_p6 = pnand %p3809_p13, %p3808_p7 }
 0x890   : > { %p2620_p8 = pneg %p2619_p6 }
 0x892   : > { %3231 = dma.done.wait (%p2620_p8), %s2158_s7, 16  }
 0x893   : > { %3233 = vsyncadd (%p2620_p8), %s2158_s7, 4294967280  ;;  %s3810_s18 = sld [smem:[#allocation28_spill]]  ;;  %p37_p9 = scmp.ge.s32.totalorder %s3505_s20, 4  }
 0x894   : > { %s3811_s26 = smov %s3240_s27  ;;  %s3812_s27 = smov %s3244_s28 }
 0x895   : > { %s3814_s29 = smov %s3505_s20  ;;  %39 = sbr.rel (!%p37_p9) target bundleno = 22 (0x16), region = 179 }
 0x899   : > { %s3813_s28 = smov %s3810_s18 }
 0x89a   :  { %2162 = vsyncpa [#allocation4], 1 }
 0x89b   :  { %2164 = vsyncpa [#allocation4 + $0x1], 1 }
 0x89c   :  { %2165 = vsyncpa [#allocation7], 1 }
 0x89d   :  { %2166 = vsyncpa [#allocation10], 1 }
 0x89e   :  { %2167 = vsyncpa [#allocation13], 1 }
 0x89f   :  { %2168 = vsyncpa [#allocation16], 1 }
 0x8a0   :  { %2169 = vsyncpa [#allocation19], 1 }
 0x8a1   :  { %2170 = vsyncpa [#allocation5], 1 }
 0x8a2   :  { %2172 = vsyncpa [#allocation5 + $0x1], 1 }

</bundles_post_ra>
